<compile_context>
chip_gen: v7x
topology: tpu7x:2x2x1
jax: 0.10.0
libtpu: 0.0.40
codegen_flags: <defaults>
</compile_context>

<pallas_src>
import math

import jax
import jax.numpy as jnp
from jax.experimental import pallas as pl
from jax.experimental.pallas import tpu as pltpu


_SQRT_HALF = 0.7071067811865476


def _erf_f32(x):
    """erf via Abramowitz & Stegun 7.1.26 rational approx (|err| ~ 1.5e-7).

    Uses exp / mul / add / approx-reciprocal / where only, so it always lowers
    on Mosaic.  The reciprocal goes to the EUP slot (approx=True) and co-issues
    with the VALU polynomial; its ~2^-12 relative error is far inside the test
    tolerance.
    """
    p = 0.3275911
    a1, a2, a3, a4, a5 = (0.254829592, -0.284496736, 1.421413741,
                          -1.453152027, 1.061405429)
    z = jnp.abs(x)
    t = pl.reciprocal(1.0 + p * z, approx=True)
    poly = ((((a5 * t + a4) * t + a3) * t + a2) * t + a1) * t
    e = 1.0 - poly * jnp.exp(-z * z)
    return jnp.where(x >= 0.0, e, -e)


def _gelu_exact_f32(x):
    # erf-based GELU == PyTorch nn.GELU() default (non-tanh).
    return 0.5 * x * (1.0 + _erf_f32(x * _SQRT_HALF))


def _make_kernel(tk, n_chunks):
    def bert_mlp_kernel(x_ref, w1_ref, b1_ref, w2_ref, b2_ref, o_ref, acc_ref):
        # x_ref:  (tm, H)  f32 activation row tile (pipelined over the grid)
        # w1_ref: (H, 4H)  bf16 linear1 weight, (in, out) layout -- resident
        # b1_ref: (1, 4H)  f32
        # w2_ref: (4H, H)  bf16 linear2 weight, (in, out) layout -- resident
        # b2_ref: (1, H)   f32
        # o_ref:  (tm, H)
        # acc_ref:(tm, H)  f32 accumulator scratch
        xb = x_ref[...].astype(jnp.bfloat16)          # bf16 MXU operand, hoisted
        acc_ref[...] = jnp.zeros_like(acc_ref)
        # Static chunk loop over the 4H dimension: the (tm, tk) intermediate is
        # consumed immediately, so the full (tm, 4H) slab never exists.
        for c in range(n_chunks):
            lo = c * tk
            hi = lo + tk
            h = jnp.dot(xb, w1_ref[:, lo:hi],
                        preferred_element_type=jnp.float32) + b1_ref[:, lo:hi]
            h = _gelu_exact_f32(h)                     # f32 VPU math (v5e-safe)
            acc_ref[...] += jnp.dot(h.astype(jnp.bfloat16), w2_ref[lo:hi, :],
                                    preferred_element_type=jnp.float32)
        # TODO(synk): nn.Dropout is identity in eval mode; training-mode dropout
        # would use pltpu.prng_seed + pltpu.stateful_bernoulli here.
        o_ref[...] = (acc_ref[...] + b2_ref[...]).astype(o_ref.dtype)

    return bert_mlp_kernel


def _choose_row_tile(n, block_rows):
    """Pick (tm, padded_n); avoid HBM padding whenever possible."""
    if n <= block_rows:
        return n, n                      # full-dim block is always legal
    c = (block_rows // 8) * 8
    while c >= 8:                        # largest multiple-of-8 divisor of n
        if n % c == 0:
            return c, n
        c -= 8
    tm = (block_rows // 8) * 8           # ragged fallback: pad (rare)
    return tm, pl.cdiv(n, tm) * tm


def _choose_col_chunk(h4, target):
    """Largest lane-aligned chunk <= target that divides 4H (else one chunk)."""
    if h4 <= target:
        return h4
    c = (target // 128) * 128
    while c >= 128:
        if h4 % c == 0:
            return c
        c -= 128
    return h4


def bert_mlp_forward(x, w1, b1, w2, b2, *, block_rows=256, block_cols=512):
    """Pallas equivalent of BertMLP.forward (dropout in eval mode).

    x:  (..., H) float32
    w1: (4H, H), b1: (4H,)   -- PyTorch nn.Linear layout (out_features, in_features)
    w2: (H, 4H), b2: (H,)
    block_rows: row-tile size (256 default; 384-512 works well on v6e's 128 MiB VMEM).
    """
    orig_shape = x.shape
    h = orig_shape[-1]
    h4 = w1.shape[0]
    assert w1.shape == (h4, h) and w2.shape == (h, h4)
    assert b1.shape == (h4,) and b2.shape == (h,)

    n = math.prod(orig_shape[:-1])
    x2d = x.reshape(n, h)

    # Pre-transpose weights to (in, out) and cast to bf16 so both kernel
    # matmuls are plain row-major bf16 MXU dots; biases stay f32 (lane-dense rows).
    w1t = w1.T.astype(jnp.bfloat16)      # (H, 4H)
    w2t = w2.T.astype(jnp.bfloat16)      # (4H, H)
    b1r = b1.reshape(1, h4).astype(jnp.float32)
    b2r = b2.reshape(1, h).astype(jnp.float32)

    tm, n_pad = _choose_row_tile(n, block_rows)
    if n_pad != n:
        # Rare fallback for ragged n with no tile-sized divisor.
        # TODO(synk): mask the ragged tail tile in-kernel instead of padding.
        x2d = jnp.pad(x2d, ((0, n_pad - n), (0, 0)))

    tk = _choose_col_chunk(h4, block_cols)
    n_chunks = h4 // tk

    # Explicit VMEM budget: resident bf16 weights (single-buffered) + f32 biases
    # + double-buffered x/out row tiles + accumulator + in-flight chunk temps.
    weight_bytes = 2 * h * h4 * 2                 # bf16, single-buffered resident
    bias_bytes = (h4 + h) * 4
    act_bytes = 2 * 2 * tm * h * 4                # x + out tiles, double-buffered
    acc_bytes = tm * h * 4
    chunk_bytes = 4 * tm * tk * 4                 # GELU chunk + temps headroom
    vmem_needed = weight_bytes + bias_bytes + act_bytes + acc_bytes + chunk_bytes
    vmem_limit = int(min(max(2 * vmem_needed, 32 * 1024 * 1024),
                         56 * 1024 * 1024))       # <= v7x 64 MiB/TC physical

    flops = 4 * n_pad * h * h4                    # two matmuls, 2*N*H*4H each
    bytes_accessed = (2 * n_pad * h * 4           # x read + out write
                      + 2 * h * h4 * 2            # bf16 weights
                      + (h4 + h) * 4)             # biases

    out = pl.pallas_call(
        _make_kernel(tk, n_chunks),
        out_shape=jax.ShapeDtypeStruct((n_pad, h), x.dtype),
        grid=(n_pad // tm,),
        in_specs=[
            pl.BlockSpec((tm, h), lambda i: (i, 0)),        # x row tile (pipelined)
            pl.BlockSpec((h, h4), lambda i: (0, 0),
                         pipeline_mode=pl.Buffered(1)),     # W1^T (resident, 1 buf)
            pl.BlockSpec((1, h4), lambda i: (0, 0),
                         pipeline_mode=pl.Buffered(1)),     # b1
            pl.BlockSpec((h4, h), lambda i: (0, 0),
                         pipeline_mode=pl.Buffered(1)),     # W2^T (resident, 1 buf)
            pl.BlockSpec((1, h), lambda i: (0, 0),
                         pipeline_mode=pl.Buffered(1)),     # b2
        ],
        out_specs=pl.BlockSpec((tm, h), lambda i: (i, 0)),
        scratch_shapes=[pltpu.VMEM((tm, h), jnp.float32)],  # f32 accumulator
        compiler_params=pltpu.CompilerParams(
            dimension_semantics=("parallel",),
            vmem_limit_bytes=vmem_limit,
        ),
        cost_estimate=pl.CostEstimate(
            flops=flops,
            transcendentals=n_pad * h4,
            bytes_accessed=bytes_accessed,
        ),
    )(x2d, w1t, b1r, w2t, b2r)

    return out[:n].reshape(orig_shape)


if __name__ == "__main__":
    # Small TransformerConfig-like sizes: hidden_size=32 -> intermediate=128.
    batch, seq, hidden = 2, 128, 32
    inter = 4 * hidden

    key = jax.random.PRNGKey(0)
    k_x, k_w1, k_b1, k_w2, k_b2 = jax.random.split(key, 5)

    # PyTorch nn.Linear default init: U(-1/sqrt(fan_in), 1/sqrt(fan_in)).
    k1 = 1.0 / math.sqrt(hidden)
    k2 = 1.0 / math.sqrt(inter)
    w1 = jax.random.uniform(k_w1, (inter, hidden), jnp.float32, -k1, k1)
    b1 = jax.random.uniform(k_b1, (inter,), jnp.float32, -k1, k1)
    w2 = jax.random.uniform(k_w2, (hidden, inter), jnp.float32, -k2, k2)
    b2 = jax.random.uniform(k_b2, (hidden,), jnp.float32, -k2, k2)
    x = jax.random.normal(k_x, (batch, seq, hidden), jnp.float32)

    out = bert_mlp_forward(x, w1, b1, w2, b2)
    out = jax.block_until_ready(out)

    # Reference: plain-JAX BertMLP forward (dropout == identity in eval mode),
    # erf-exact GELU like PyTorch nn.GELU(), full-precision matmuls.
    hp = jax.lax.Precision.HIGHEST
    h_ref = jnp.dot(x, w1.T, precision=hp) + b1
    h_ref = jax.nn.gelu(h_ref, approximate=False)
    ref = jnp.dot(h_ref, w2.T, precision=hp) + b2

    assert out.shape == x.shape, out.shape
    assert out.dtype == jnp.float32
    # Tolerance accounts for explicit bf16 MXU operands (f32 accumulation) plus
    # the approx-reciprocal erf, vs the HIGHEST-precision XLA reference.
    assert jnp.allclose(out, ref, atol=2e-2, rtol=2e-2), (
        float(jnp.max(jnp.abs(out - ref))))

    print("KERNEL_OK")
</pallas_src>

<mosaic_0001>
module attributes {stable_mosaic.version = 11 : i64} {
  func.func @bert_mlp_kernel(%arg0: i32, %arg1: memref<256x32xf32, #tpu.memory_space<vmem>>, %arg2: memref<32x128xbf16, #tpu.memory_space<vmem>>, %arg3: memref<1x128xf32, #tpu.memory_space<vmem>>, %arg4: memref<128x32xbf16, #tpu.memory_space<vmem>>, %arg5: memref<1x32xf32, #tpu.memory_space<vmem>>, %arg6: memref<256x32xf32, #tpu.memory_space<vmem>>, %arg7: memref<256x32xf32, #tpu.memory_space<vmem>>) attributes {dimension_semantics = [#tpu.dimension_semantics<parallel>], iteration_bounds = array<i64: 1>, scalar_prefetch = 0 : i64, scratch_operands = 1 : i64, tpu.core_type = #tpu.core_type<tc>, window_params = [{transform_indices = @transform_0, window_bounds = array<i64: 256, 32>}, {pipeline_mode = #tpu.pipeline_mode<synchronous>, transform_indices = @transform_1, window_bounds = array<i64: 32, 128>}, {pipeline_mode = #tpu.pipeline_mode<synchronous>, transform_indices = @transform_2, window_bounds = array<i64: 1, 128>}, {pipeline_mode = #tpu.pipeline_mode<synchronous>, transform_indices = @transform_3, window_bounds = array<i64: 128, 32>}, {pipeline_mode = #tpu.pipeline_mode<synchronous>, transform_indices = @transform_4, window_bounds = array<i64: 1, 32>}, {transform_indices = @transform_5, window_bounds = array<i64: 256, 32>}]} {
    %c0 = arith.constant 0 : index
    %c0_0 = arith.constant 0 : index
    %0 = vector.load %arg1[%c0, %c0_0] : memref<256x32xf32, #tpu.memory_space<vmem>>, vector<256x32xf32>
    %1 = arith.truncf %0 : vector<256x32xf32> to vector<256x32xbf16>
    %cst = arith.constant 0.000000e+00 : f32
    %2 = vector.broadcast %cst : f32 to vector<256x32xf32>
    %c0_1 = arith.constant 0 : index
    %c0_2 = arith.constant 0 : index
    %3 = vector.load %arg7[%c0_1, %c0_2] : memref<256x32xf32, #tpu.memory_space<vmem>>, vector<256x32xf32>
    tpu.vector_store %arg7[%c0_1, %c0_2], %2 {strides = array<i32>} : memref<256x32xf32, #tpu.memory_space<vmem>>, vector<256x32xf32>,
    %c0_3 = arith.constant 0 : index
    %c0_4 = arith.constant 0 : index
    %4 = vector.load %arg2[%c0_3, %c0_4] : memref<32x128xbf16, #tpu.memory_space<vmem>>, vector<32x128xbf16>
    %cst_5 = arith.constant dense<0.000000e+00> : vector<256x128xf32>
    %5 = tpu.matmul %1, %4, %cst_5 {dimension_numbers = #tpu.dot_dimension_numbers<[1], [0], [0], [1], [0, 0, 1, 1], [], []>} : vector<256x32xbf16>, vector<32x128xbf16>, vector<256x128xf32> -> vector<256x128xf32>
    %c0_6 = arith.constant 0 : index
    %c0_7 = arith.constant 0 : index
    %6 = vector.load %arg3[%c0_6, %c0_7] : memref<1x128xf32, #tpu.memory_space<vmem>>, vector<1x128xf32>
    %7 = vector.broadcast %6 : vector<1x128xf32> to vector<256x128xf32>
    %8 = arith.addf %5, %7 : vector<256x128xf32>
    %cst_8 = arith.constant 5.000000e-01 : f32
    %9 = vector.broadcast %cst_8 : f32 to vector<256x128xf32>
    %10 = arith.mulf %9, %8 : vector<256x128xf32>
    %cst_9 = arith.constant 0.707106769 : f32
    %11 = vector.broadcast %cst_9 : f32 to vector<256x128xf32>
    %12 = arith.mulf %8, %11 : vector<256x128xf32>
    %13 = math.absf %12 : vector<256x128xf32>
    %cst_10 = arith.constant 0.327591091 : f32
    %14 = vector.broadcast %cst_10 : f32 to vector<256x128xf32>
    %15 = arith.mulf %14, %13 : vector<256x128xf32>
    %cst_11 = arith.constant 1.000000e+00 : f32
    %16 = vector.broadcast %cst_11 : f32 to vector<256x128xf32>
    %17 = arith.addf %16, %15 : vector<256x128xf32>
    %18 = tpu.reciprocal %17 {approx = true} : vector<256x128xf32> -> vector<256x128xf32>
    %cst_12 = arith.constant 1.06140542 : f32
    %19 = vector.broadcast %cst_12 : f32 to vector<256x128xf32>
    %20 = arith.mulf %19, %18 : vector<256x128xf32>
    %cst_13 = arith.constant -1.45315206 : f32
    %21 = vector.broadcast %cst_13 : f32 to vector<256x128xf32>
    %22 = arith.addf %20, %21 : vector<256x128xf32>
    %23 = arith.mulf %22, %18 : vector<256x128xf32>
    %cst_14 = arith.constant 1.42141378 : f32
    %24 = vector.broadcast %cst_14 : f32 to vector<256x128xf32>
    %25 = arith.addf %23, %24 : vector<256x128xf32>
    %26 = arith.mulf %25, %18 : vector<256x128xf32>
    %cst_15 = arith.constant -0.284496725 : f32
    %27 = vector.broadcast %cst_15 : f32 to vector<256x128xf32>
    %28 = arith.addf %26, %27 : vector<256x128xf32>
    %29 = arith.mulf %28, %18 : vector<256x128xf32>
    %cst_16 = arith.constant 0.254829586 : f32
    %30 = vector.broadcast %cst_16 : f32 to vector<256x128xf32>
    %31 = arith.addf %29, %30 : vector<256x128xf32>
    %32 = arith.mulf %31, %18 : vector<256x128xf32>
    %cst_17 = arith.constant 0.000000e+00 : f32
    %33 = vector.broadcast %cst_17 : f32 to vector<256x128xf32>
    %34 = arith.subf %33, %13 : vector<256x128xf32>
    %35 = arith.mulf %34, %13 : vector<256x128xf32>
    %36 = math.exp %35 : vector<256x128xf32>
    %37 = arith.mulf %32, %36 : vector<256x128xf32>
    %cst_18 = arith.constant 1.000000e+00 : f32
    %38 = vector.broadcast %cst_18 : f32 to vector<256x128xf32>
    %39 = arith.subf %38, %37 : vector<256x128xf32>
    %cst_19 = arith.constant 0.000000e+00 : f32
    %40 = vector.broadcast %cst_19 : f32 to vector<256x128xf32>
    %41 = arith.cmpf oge, %12, %40 : vector<256x128xf32>
    %cst_20 = arith.constant 0.000000e+00 : f32
    %42 = vector.broadcast %cst_20 : f32 to vector<256x128xf32>
    %43 = arith.subf %42, %39 : vector<256x128xf32>
    %44 = arith.select %41, %39, %43 : vector<256x128xi1>, vector<256x128xf32>
    %cst_21 = arith.constant 1.000000e+00 : f32
    %45 = vector.broadcast %cst_21 : f32 to vector<256x128xf32>
    %46 = arith.addf %45, %44 : vector<256x128xf32>
    %47 = arith.mulf %10, %46 : vector<256x128xf32>
    %c0_22 = arith.constant 0 : index
    %c0_23 = arith.constant 0 : index
    %48 = vector.load %arg7[%c0_22, %c0_23] : memref<256x32xf32, #tpu.memory_space<vmem>>, vector<256x32xf32>
    %49 = arith.truncf %47 : vector<256x128xf32> to vector<256x128xbf16>
    %c0_24 = arith.constant 0 : index
    %c0_25 = arith.constant 0 : index
    %50 = vector.load %arg4[%c0_24, %c0_25] : memref<128x32xbf16, #tpu.memory_space<vmem>>, vector<128x32xbf16>
    %cst_26 = arith.constant dense<0.000000e+00> : vector<256x32xf32>
    %51 = tpu.matmul %49, %50, %cst_26 {dimension_numbers = #tpu.dot_dimension_numbers<[1], [0], [0], [1], [0, 0, 1, 1], [], []>} : vector<256x128xbf16>, vector<128x32xbf16>, vector<256x32xf32> -> vector<256x32xf32>
    %52 = arith.addf %48, %51 : vector<256x32xf32>
    %c0_27 = arith.constant 0 : index
    %c0_28 = arith.constant 0 : index
    %53 = vector.load %arg7[%c0_27, %c0_28] : memref<256x32xf32, #tpu.memory_space<vmem>>, vector<256x32xf32>
    tpu.vector_store %arg7[%c0_27, %c0_28], %52 {strides = array<i32>} : memref<256x32xf32, #tpu.memory_space<vmem>>, vector<256x32xf32>,
    %c0_29 = arith.constant 0 : index
    %c0_30 = arith.constant 0 : index
    %54 = vector.load %arg7[%c0_29, %c0_30] : memref<256x32xf32, #tpu.memory_space<vmem>>, vector<256x32xf32>
    %c0_31 = arith.constant 0 : index
    %c0_32 = arith.constant 0 : index
    %55 = vector.load %arg5[%c0_31, %c0_32] : memref<1x32xf32, #tpu.memory_space<vmem>>, vector<1x32xf32>
    %56 = vector.broadcast %55 : vector<1x32xf32> to vector<256x32xf32>
    %57 = arith.addf %54, %56 : vector<256x32xf32>
    %c0_33 = arith.constant 0 : index
    %c0_34 = arith.constant 0 : index
    %58 = vector.load %arg6[%c0_33, %c0_34] : memref<256x32xf32, #tpu.memory_space<vmem>>, vector<256x32xf32>
    tpu.vector_store %arg6[%c0_33, %c0_34], %57 {strides = array<i32>} : memref<256x32xf32, #tpu.memory_space<vmem>>, vector<256x32xf32>,
    return
  }
  func.func @transform_0(%arg0: i32) -> (i32, i32) {
    %c0_i32 = arith.constant 0 : i32
    %c0_i32_0 = arith.constant 0 : i32
    return %arg0, %c0_i32 : i32, i32
  }
  func.func @transform_1(%arg0: i32) -> (i32, i32) {
    %c0_i32 = arith.constant 0 : i32
    %c0_i32_0 = arith.constant 0 : i32
    %c0_i32_1 = arith.constant 0 : i32
    return %c0_i32, %c0_i32_0 : i32, i32
  }
  func.func @transform_2(%arg0: i32) -> (i32, i32) {
    %c0_i32 = arith.constant 0 : i32
    %c0_i32_0 = arith.constant 0 : i32
    %c0_i32_1 = arith.constant 0 : i32
    return %c0_i32, %c0_i32_0 : i32, i32
  }
  func.func @transform_3(%arg0: i32) -> (i32, i32) {
    %c0_i32 = arith.constant 0 : i32
    %c0_i32_0 = arith.constant 0 : i32
    %c0_i32_1 = arith.constant 0 : i32
    return %c0_i32, %c0_i32_0 : i32, i32
  }
  func.func @transform_4(%arg0: i32) -> (i32, i32) {
    %c0_i32 = arith.constant 0 : i32
    %c0_i32_0 = arith.constant 0 : i32
    %c0_i32_1 = arith.constant 0 : i32
    return %c0_i32, %c0_i32_0 : i32, i32
  }
  func.func @transform_5(%arg0: i32) -> (i32, i32) {
    %c0_i32 = arith.constant 0 : i32
    %c0_i32_0 = arith.constant 0 : i32
    return %arg0, %c0_i32 : i32, i32
  }
}

</mosaic_0001>

<bundles_post_ra>
// kernel: tpu_custom_call.1
= control target key start
LH: loop header
LB: loop body
LE: loop exit
PB: predicated region body
PF: predicated region fallthrough
CT: control target
= control target key end

     0   :  { %vm69_vm0 = vcmask 261120   ;;  %s3229_s1 = inlined_call_operand.vmem [shape: bf16[32,128], index: 1, kind: input, shape index: {}]   ;;  %s3230_s0 = inlined_call_operand.vmem [shape: f32[256,32], index: 0, kind: input, shape index: {}]   ;;  %s3231_s3 = inlined_call_operand.vmem [shape: bf16[128,32], index: 3, kind: input, shape index: {}]   ;;  %s3232_s2 = inlined_call_operand.vmem [shape: f32[1,128], index: 2, kind: input, shape index: {}]   ;;  %s3233_s4 = inlined_call_operand.vmem [shape: f32[1,32], index: 4, kind: input, shape index: {}]   ;;  %s3234_s5 = inlined_call_operand.vmem [shape: f32[256,32], index: 5, kind: output, shape index: {}]  }
   0x1   :  { %v1781_v0 = vld [vmem:[%s3229_s1] sm:$0xff]   ;;  %v1782_v1 = vld [vmem:[%s3229_s1 + $0x8] sm:$0xff]   ;;  %v23_v5 = vld [vmem:[%s3230_s0 + $0x10] sm:$0xff] }
   0x2   :  { %1680 = vmatprep.subr.bf16.mxu0 %v1781_v0  ;;  %v21_v2 = vld [vmem:[%s3230_s0] sm:$0xff]  ;;  %v22_v3 = vld [vmem:[%s3230_s0 + $0x8] sm:$0xff]  ;;  %v24_v6 = vld [vmem:[%s3230_s0 + $0x18] sm:$0xff] }
   0x3   :  { %1681 = vmatpush3.bf16.msra.mxu0 %v1781_v0  ;;  %v53_v4 = vpack.c.bf16 %v22_v3, %v21_v2  ;;  %v25_v7 = vld [vmem:[%s3230_s0 + $0x20] sm:$0xff]  ;;  %v26_v8 = vld [vmem:[%s3230_s0 + $0x28] sm:$0xff]  ;;  %v54_v9 = vpack.c.bf16 %v24_v6, %v23_v5  ;;  %v27_v11 = vld [vmem:[%s3230_s0 + $0x30] sm:$0xff] }
   0x4   :  { %1682 = vmatprep.subr.bf16.mxu0 %v1782_v1  ;;  %v55_v10 = vpack.c.bf16 %v26_v8, %v25_v7  ;;  %v28_v12 = vld [vmem:[%s3230_s0 + $0x38] sm:$0xff]  ;;  %v29_v13 = vld [vmem:[%s3230_s0 + $0x40] sm:$0xff]  ;;  %v30_v14 = vld [vmem:[%s3230_s0 + $0x48] sm:$0xff] }
   0x5   :  { %1684 = vmatprep.mubr.msk.bf16.mxu0 %vm69_vm0, %v53_v4  ;;  %v56_v15 = vpack.c.bf16 %v28_v12, %v27_v11  ;;  %v57_v16 = vpack.c.bf16 %v30_v14, %v29_v13  ;;  %v31_v17 = vld [vmem:[%s3230_s0 + $0x50] sm:$0xff]  ;;  %v32_v18 = vld [vmem:[%s3230_s0 + $0x58] sm:$0xff]  ;;  %v33_v19 = vld [vmem:[%s3230_s0 + $0x60] sm:$0xff] }
   0x6   :  { %v34_v20 = vld [vmem:[%s3230_s0 + $0x68] sm:$0xff]  ;;  %v58_v21 = vpack.c.bf16 %v32_v18, %v31_v17  ;;  %v35_v23 = vld [vmem:[%s3230_s0 + $0x70] sm:$0xff]  ;;  %v36_v24 = vld [vmem:[%s3230_s0 + $0x78] sm:$0xff] }
   0x7   :  { %1683 = vmatpush3.bf16.msra.mxu0 %v1782_v1  ;;  %v59_v22 = vpack.c.bf16 %v34_v20, %v33_v19  ;;  %v37_v25 = vld [vmem:[%s3230_s0 + $0x80] sm:$0xff]  ;;  %v38_v26 = vld [vmem:[%s3230_s0 + $0x88] sm:$0xff]  ;;  %v60_v27 = vpack.c.bf16 %v36_v24, %v35_v23  ;;  %v39_v29 = vld [vmem:[%s3230_s0 + $0x90] sm:$0xff] }
   0x8   :  { %v61_v28 = vpack.c.bf16 %v38_v26, %v37_v25  ;;  %v40_v30 = vld [vmem:[%s3230_s0 + $0x98] sm:$0xff]  ;;  %v41_v31 = vld [vmem:[%s3230_s0 + $0xa0] sm:$0xff]  ;;  %v42_v32 = vld [vmem:[%s3230_s0 + $0xa8] sm:$0xff] }
   0x9   :  { %v62_v33 = vpack.c.bf16 %v40_v30, %v39_v29  ;;  %v63_v34 = vpack.c.bf16 %v42_v32, %v41_v31  ;;  %v43_v35 = vld [vmem:[%s3230_s0 + $0xb0] sm:$0xff]  ;;  %v44_v36 = vld [vmem:[%s3230_s0 + $0xb8] sm:$0xff]  ;;  %v45_v37 = vld [vmem:[%s3230_s0 + $0xc0] sm:$0xff] }
   0xa   :  { %1685 = vmatmul.mubr.msk.bf16.vlgmr.msra.gmra.mrb[0].mxu0 %vm69_vm0, %v54_v9  ;;  %v46_v38 = vld [vmem:[%s3230_s0 + $0xc8] sm:$0xff]  ;;  %v64_v39 = vpack.c.bf16 %v44_v36, %v43_v35  ;;  %v47_v41 = vld [vmem:[%s3230_s0 + $0xd0] sm:$0xff]  ;;  %v48_v42 = vld [vmem:[%s3230_s0 + $0xd8] sm:$0xff] }
   0xb   :  { %1688 = vmatprep.mubr.msk.bf16.mxu0 %vm69_vm0, %v55_v10  ;;  %v65_v40 = vpack.c.bf16 %v46_v38, %v45_v37  ;;  %v49_v43 = vld [vmem:[%s3230_s0 + $0xe0] sm:$0xff]  ;;  %v50_v44 = vld [vmem:[%s3230_s0 + $0xe8] sm:$0xff]  ;;  %v66_v45 = vpack.c.bf16 %v48_v42, %v47_v41  ;;  %v51_v47 = vld [vmem:[%s3230_s0 + $0xf0] sm:$0xff] }
   0xc   :  { %v67_v46 = vpack.c.bf16 %v50_v44, %v49_v43  ;;  %v52_v48 = vld [vmem:[%s3230_s0 + $0xf8] sm:$0xff]  ;;  %v1783_v50 = vld [vmem:[%s3231_s3] sm:$0xff]   ;;  %v1784_v51 = vld [vmem:[%s3231_s3 + $0x8] sm:$0xff]  }
   0xd   :  { %v68_v49 = vpack.c.bf16 %v52_v48, %v51_v47  ;;  %1716 = vmatprep.subr.bf16.mxu0 %v1783_v50  ;;  %1764 = vmatprep.subr.bf16.mxu1 %v1783_v50  ;;  %v1785_v52 = vld [vmem:[%s3231_s3 + $0x10] sm:$0xff]   ;;  %v1786_v53 = vld [vmem:[%s3231_s3 + $0x18] sm:$0xff]   ;;  %v1787_v54 = vld [vmem:[%s3231_s3 + $0x20] sm:$0xff]  }
   0xe   :  { %1717 = vmatpush3.bf16.msra.mxu0 %v1783_v50  ;;  %1772 = vmatpush3.bf16.msra.mxu1 %v1783_v50  ;;  %v2087_v55 = vld [vmem:[%s3232_s2] ss:$0 sm:$0xff]  ;;  %v1788_v0 = vld [vmem:[%s3231_s3 + $0x28] sm:$0xff]  }
   0xf   :  { %1718 = vmatprep.subr.bf16.mxu0 %v1784_v51  ;;  %1765 = vmatprep.subr.bf16.mxu1 %v1784_v51 }
  0x12   :  { %1689 = vmatmul.mubr.msk.bf16.gmra.mrb[4].mxu0 %vm69_vm0, %v56_v15  ;;  %1773 = vmatpush3.bf16.msra.mxu1 %v1784_v51 }
  0x13   :  { %1692 = vmatprep.mubr.msk.bf16.mxu0 %vm69_vm0, %v57_v16  ;;  %1719 = vmatpush3.bf16.msra.mxu0 %v1784_v51 }
  0x14   :  { %1720 = vmatprep.subr.bf16.mxu0 %v1785_v52  ;;  %1766 = vmatprep.subr.bf16.mxu1 %v1785_v52 }
  0x16   :  { %1774 = vmatpush3.bf16.msra.mxu1 %v1785_v52 }
  0x17   :  { %1721 = vmatpush3.bf16.msra.mxu0 %v1785_v52  ;;  %1767 = vmatprep.subr.bf16.mxu1 %v1786_v53 }
  0x18   :  { %1722 = vmatprep.subr.bf16.mxu0 %v1786_v53 }
  0x1a   :  { %1693 = vmatmul.mubr.msk.bf16.gmra.mrb[8].mxu0 %vm69_vm0, %v58_v21  ;;  %1775 = vmatpush3.bf16.msra.mxu1 %v1786_v53 }
  0x1b   :  { %1696 = vmatprep.mubr.msk.bf16.mxu0 %vm69_vm0, %v59_v22  ;;  %1723 = vmatpush3.bf16.msra.mxu0 %v1786_v53  ;;  %v1789_v22 = vld [vmem:[%s3231_s3 + $0x30] sm:$0xff]  }
  0x1c   :  { %1724 = vmatprep.subr.bf16.mxu0 %v1787_v54  ;;  %1768 = vmatprep.subr.bf16.mxu1 %v1787_v54 }
  0x1e   :  { %1776 = vmatpush3.bf16.msra.mxu1 %v1787_v54 }
  0x1f   :  { %1725 = vmatpush3.bf16.msra.mxu0 %v1787_v54  ;;  %1769 = vmatprep.subr.bf16.mxu1 %v1788_v0 }
  0x20   :  { %1726 = vmatprep.subr.bf16.mxu0 %v1788_v0 }
  0x22   :  { %1697 = vmatmul.mubr.msk.bf16.gmra.mrb[12].mxu0 %vm69_vm0, %v60_v27  ;;  %1777 = vmatpush3.bf16.msra.mxu1 %v1788_v0 }
  0x23   :  { %1700 = vmatprep.mubr.msk.bf16.mxu0 %vm69_vm0, %v61_v28  ;;  %1727 = vmatpush3.bf16.msra.mxu0 %v1788_v0 }
  0x24   :  { %1728 = vmatprep.subr.bf16.mxu0 %v1789_v22  ;;  %1770 = vmatprep.subr.bf16.mxu1 %v1789_v22 }
  0x26   :  { %1778 = vmatpush3.bf16.msra.mxu1 %v1789_v22 }
  0x27   :  { %1729 = vmatpush3.bf16.msra.mxu0 %v1789_v22 }
  0x2a   :  { %1701 = vmatmul.mubr.msk.bf16.gmra.mrb[16].mxu0 %vm69_vm0, %v62_v33 }
  0x2b   :  { %1704 = vmatprep.mubr.msk.bf16.mxu0 %vm69_vm0, %v63_v34 }
  0x32   :  { %1705 = vmatmul.mubr.msk.bf16.gmra.mrb[20].mxu0 %vm69_vm0, %v64_v39 }
  0x33   :  { %1708 = vmatprep.mubr.msk.bf16.mxu0 %vm69_vm0, %v65_v40 }
  0x3a   :  { %1709 = vmatmul.mubr.msk.bf16.gmra.mrb[24].mxu0 %vm69_vm0, %v66_v45 }
  0x3b   :  { %1712 = vmatprep.mubr.msk.bf16.mxu0 %vm69_vm0, %v67_v46 }
  0x42   :  { %1713 = vmatmul.mubr.msk.bf16.gmra.mrb[28].mxu0 %vm69_vm0, %v68_v49 }
  0xdd   :  { %v1686_v56 = vpop.f32.mrb[0].mxu0 }
  0xde   :  { %v2090_v57 = vadd.f32 %v1686_v56, %v2087_v55  ;;  %v207_v58 = vpop.f32.mrb[1].mxu0 }
  0xdf   :  { %v2093_v59 = vadd.f32 %v2087_v55, %v207_v58  ;;  %v1687_v60 = vpop.f32.mrb[2].mxu0 }
  0xe0   :  { %v2096_v61 = vmul.f32 0.70710677, %v2090_v57  ;;  %v2099_v62 = vadd.f32 %v1687_v60, %v2087_v55  ;;  %v210_v63 = vpop.f32.mrb[3].mxu0  ;;  %v2159_v48 = vmul.f32 0.5, %v2090_v57 }
  0xe1   :  { %v2105_v1 = vmul.f32 0.70710677, %v2093_v59  ;;  %v2108_v2 = vadd.f32 %v2087_v55, %v210_v63  ;;  %v2162_v51 = vmul.f32 0.5, %v2093_v59 }
  0xe2   :  { %v400_v3 = vand.u32 2147483647, %v2096_v61  ;;  %v2112_v4 = vmul.f32 0.70710677, %v2099_v62  ;;  %v2167_v56 = vmul.f32 0.5, %v2099_v62  ;;  %vm1008_vm1 = vcmp.ge.f32.partialorder %v2096_v61, 0.0 }
  0xe3   :  { %v398_v5 = vand.u32 2147483647, %v2105_v1  ;;  %v2116_v6 = vmul.f32 0.70710677, %v2108_v2  ;;  %vm1006_vm3 = vcmp.ge.f32.partialorder %v2105_v1, 0.0 }
  0xe4   :  { %v432_v7 = vmul.f32 0.3275911, %v400_v3  ;;  %v401_v8 = vand.u32 2147483647, %v2112_v4  ;;  %v816_v25 = vsub.f32 0.0, %v400_v3  ;;  %vm1009_vm2 = vcmp.ge.f32.partialorder %v2112_v4, 0.0 }
  0xe5   :  { %v430_v9 = vmul.f32 0.3275911, %v398_v5  ;;  %v399_v10 = vand.u32 2147483647, %v2116_v6  ;;  %v1690_v13 = vpop.f32.mrb[4].mxu0  ;;  %v814_v28 = vsub.f32 0.0, %v398_v5 }
  0xe6   :  { %v464_v11 = vadd.f32 1.0, %v432_v7  ;;  %v433_v12 = vmul.f32 0.3275911, %v401_v8  ;;  %v223_v16 = vpop.f32.mrb[5].mxu0  ;;  %v2123_v21 = vadd.f32 %v1690_v13, %v2087_v55  ;;  %v817_v31 = vsub.f32 0.0, %v401_v8 }
  0xe7   :  { %v462_v14 = vadd.f32 1.0, %v430_v9  ;;  %v431_v15 = vmul.f32 0.3275911, %v399_v10  ;;  %v1691_v18 = vpop.f32.mrb[6].mxu0  ;;  %v848_v35 = vmul.f32 %v816_v25, %v400_v3  ;;  %v846_v38 = vmul.f32 %v814_v28, %v398_v5  ;;  %v1790_v28 = vld [vmem:[%s3231_s3 + $0x38] sm:$0xff]  }
  0xe8   :  { %1791 = vrcp.f32 %v464_v11  ;;  %v465_v17 = vadd.f32 1.0, %v433_v12  ;;  %v2120_v19 = vpop.f32.mrb[7].mxu0  ;;  %v2129_v23 = vadd.f32 %v1691_v18, %v2087_v55  ;;  %v2132_v24 = vmul.f32 0.70710677, %v2123_v21  ;;  %1730 = vmatprep.subr.bf16.mxu0 %v1790_v28  ;;  %1771 = vmatprep.subr.bf16.mxu1 %v1790_v28 }
  0xe9   :  { %1793 = vrcp.f32 %v462_v14  ;;  %v463_v20 = vadd.f32 1.0, %v431_v15  ;;  %v815_v39 = vsub.f32 0.0, %v399_v10  ;;  %v849_v44 = vmul.f32 %v817_v31, %v401_v8  ;;  %1731 = vmatpush3.bf16.msra.mxu0 %v1790_v28  ;;  %1779 = vmatpush3.bf16.msra.mxu1 %v1790_v28 }
  0xea   :  { %1795 = vrcp.f32 %v465_v17  ;;  %v2135_v26 = vmul.f32 0.70710677, %v2129_v23  ;;  %v2138_v29 = vand.u32 2147483647, %v2132_v24  ;;  %v2156_v46 = vadd.f32 %v2087_v55, %v223_v16 }
  0xeb   :  { %1797 = vrcp.f32 %v463_v20  ;;  %v882_v50 = vmul.f32 1.442695, %v848_v35  ;;  %v878_v54 = vmul.f32 1.442695, %v846_v38  ;;  %v847_v58 = vmul.f32 %v815_v39, %v399_v10 }
  0xec   :  { %v2141_v32 = vand.u32 2147483647, %v2135_v26  ;;  %v436_v34 = vmul.f32 0.3275911, %v2138_v29  ;;  %3245 = vst [vmem:[#allocation3_spill] sm:$0xff] %v2156_v46  ;;  %v2174_v3 = vmul.f32 0.5, %v2108_v2  ;;  %v2192_v14 = vadd.f32 %v2087_v55, %v2120_v19 }
  0xed   :  { %v1694_v27 = vpop.f32.mrb[8].mxu0  ;;  %v884_v0 = vmul.f32 1.442695, %v849_v44  ;;  %v2182_v62 = vmul.f32 0.70710677, %v2156_v46  ;;  %v820_v25 = vsub.f32 0.0, %v2138_v29 }
  0xee   :  { %v239_v30 = vpop.f32.mrb[9].mxu0  ;;  %v437_v36 = vmul.f32 0.3275911, %v2141_v32  ;;  %v468_v40 = vadd.f32 1.0, %v436_v34  ;;  %v2185_v8 = vadd.f32 %v1694_v27, %v2087_v55  ;;  %v880_v13 = vmul.f32 1.442695, %v847_v58 }
  0xef   :  { %v2143_v33 = vpop.f32.mrb[10].mxu0  ;;  %3246 = vst [vmem:[#allocation4_spill] sm:$0xff] %v2182_v62  ;;  %3247 = vst [vmem:[#allocation5_spill] sm:$0xff] %v2192_v14  ;;  %v2204_v27 = vand.u32 2147483647, %v2182_v62  ;;  %v2207_v19 = vadd.f32 %v2087_v55, %v239_v30  ;;  %vm1007_vm4 = vcmp.ge.f32.partialorder %v2116_v6, 0.0 }
  0xf0   :  { %v2149_v41 = vpop.f32.mrb[11].mxu0  ;;  %1799 = vrcp.f32 %v468_v40  ;;  %v469_v47 = vadd.f32 1.0, %v437_v36  ;;  %v2199_v20 = vmul.f32 0.70710677, %v2185_v8  ;;  %v2219_v40 = vmul.f32 0.70710677, %v2192_v14 }
  0xf1   :  { %v2222_v30 = vmul.f32 0.70710677, %v2207_v19  ;;  %vm1012_vm5 = vcmp.ge.f32.partialorder %v2132_v24, 0.0  ;;  %vm1013_vm6 = vcmp.ge.f32.partialorder %v2135_v26, 0.0 }
  0xf2   :  { %v2147_v37 = vpop.eup %1791  ;;  %1801 = vrcp.f32 %v469_v47  ;;  %v2214_v36 = vand.u32 2147483647, %v2199_v20  ;;  %3248 = vst [vmem:[#allocation6_spill] sm:$0xff] %v2219_v40  ;;  %v403_v46 = vand.u32 2147483647, %v2219_v40  ;;  %vm1016_vm7 = vcmp.ge.f32.partialorder %v2199_v20, 0.0 }
  0xf3   :  { %v2151_v42 = vpop.eup %1793  ;;  %v528_v43 = vmul.f32 1.0614054, %v2147_v37  ;;  %1803 = vpow2.f32 %v882_v50  ;;  %v2230_v50 = vmul.f32 0.5, %v2123_v21  ;;  %v2234_v58 = vand.u32 2147483647, %v2222_v30 }
  0xf4   :  { %v526_v45 = vmul.f32 1.0614054, %v2151_v42  ;;  %v2164_v52 = vpop.eup %1795  ;;  %1805 = vpow2.f32 %v884_v0  ;;  %v434_v21 = vmul.f32 0.3275911, %v2204_v27  ;;  %v819_v4 = vsub.f32 0.0, %v403_v46 }
  0xf5   :  { %v560_v49 = vadd.f32 -1.4531521, %v528_v43  ;;  %v2169_v60 = vpop.f32.mrb[12].mxu0  ;;  %v529_v57 = vmul.f32 1.0614054, %v2164_v52  ;;  %v2178_v5 = vpop.eup %1797  ;;  %1807 = vpow2.f32 %v878_v54  ;;  %v852_v54 = vmul.f32 %v820_v25, %v2138_v29 }
  0xf6   :  { %v558_v53 = vadd.f32 -1.4531521, %v526_v45  ;;  %v2176_v59 = vpop.f32.mrb[13].mxu0  ;;  %v527_v2 = vmul.f32 1.0614054, %v2178_v5  ;;  %v821_v25 = vsub.f32 0.0, %v2141_v32 }
  0xf7   :  { %v592_v63 = vmul.f32 %v2147_v37, %v560_v49  ;;  %v2187_v9 = vpop.f32.mrb[14].mxu0  ;;  %v561_v11 = vadd.f32 -1.4531521, %v529_v57  ;;  %vm1014_vm8 = vcmp.ge.f32.partialorder %v2222_v30, 0.0 }
  0xf8   :  { %v590_v7 = vmul.f32 %v2151_v42, %v558_v53  ;;  %v2194_v15 = vpop.f32.mrb[15].mxu0  ;;  %v559_v18 = vadd.f32 -1.4531521, %v527_v2  ;;  %v440_v53 = vmul.f32 0.3275911, %v2214_v36  ;;  %v2386_v6 = vadd.f32 %v2187_v9, %v2087_v55 }
  0xf9   :  { %v624_v10 = vadd.f32 1.4214138, %v592_v63  ;;  %v593_v17 = vmul.f32 %v2164_v52, %v561_v11 }
  0xfa   :  { %v622_v12 = vadd.f32 1.4214138, %v590_v7  ;;  %v591_v35 = vmul.f32 %v2178_v5, %v559_v18  ;;  %v2216_v38 = vpop.eup %1799  ;;  %v472_v2 = vadd.f32 1.0, %v440_v53  ;;  %v890_v53 = vmul.f32 1.442695, %v852_v54 }
  0xfb   :  { %v656_v16 = vmul.f32 %v2147_v37, %v624_v10  ;;  %v625_v34 = vadd.f32 1.4214138, %v593_v17  ;;  %v532_v47 = vmul.f32 1.0614054, %v2216_v38  ;;  %v2401_v9 = vmul.f32 0.70710677, %v2386_v6 }
  0xfc   :  { %v654_v22 = vmul.f32 %v2151_v42, %v622_v12  ;;  %v623_v45 = vadd.f32 1.4214138, %v591_v35  ;;  %v2239_v11 = vpop.eup %1801  ;;  %v438_v12 = vmul.f32 0.3275911, %v2234_v58  ;;  %1809 = vrcp.f32 %v472_v2 }
  0xfd   :  { %v688_v31 = vadd.f32 -0.28449672, %v656_v16  ;;  %v657_v44 = vmul.f32 %v2164_v52, %v625_v34  ;;  %v2227_v49 = vpop.f32.mrb[16].mxu0  ;;  %v564_v10 = vadd.f32 -1.4531521, %v532_v47  ;;  %v1804_v34 = vpop.eup %1803  ;;  %1811 = vpow2.f32 %v880_v13 }
  0xfe   :  { %v686_v39 = vadd.f32 -0.28449672, %v654_v22  ;;  %v2236_v63 = vpop.f32.mrb[17].mxu0  ;;  %v655_v7 = vmul.f32 %v2178_v5, %v623_v45  ;;  %v533_v29 = vmul.f32 1.0614054, %v2239_v11  ;;  %v853_v13 = vmul.f32 %v821_v25, %v2141_v32 }
  0xff   :  { %v720_v43 = vmul.f32 %v2147_v37, %v688_v31  ;;  %v689_v0 = vadd.f32 -0.28449672, %v657_v44  ;;  %v2245_v16 = vpop.f32.mrb[18].mxu0  ;;  %v596_v28 = vmul.f32 %v2216_v38, %v564_v10  ;;  %vm1021_vm13 = vcmp.ge.f32.partialorder %v2401_v9, 0.0 }
 0x100   :  { %v687_v22 = vadd.f32 -0.28449672, %v655_v7  ;;  %v2250_v31 = vpop.f32.mrb[19].mxu0  ;;  %v718_v35 = vmul.f32 %v2151_v42, %v686_v39 }
 0x101   :  { %v752_v57 = vadd.f32 0.2548296, %v720_v43  ;;  %v721_v18 = vmul.f32 %v2164_v52, %v689_v0  ;;  %v628_v45 = vadd.f32 1.4214138, %v596_v28  ;;  %v470_v0 = vadd.f32 1.0, %v438_v12  ;;  %v1806_v28 = vpop.eup %1805 }
 0x102   :  { %v719_v2 = vmul.f32 %v2178_v5, %v687_v22  ;;  %v466_v22 = vadd.f32 1.0, %v434_v21  ;;  %v2280_v21 = vadd.f32 %v2143_v33, %v2087_v55 }
 0x103   :  { %v784_v17 = vmul.f32 %v2147_v37, %v752_v57  ;;  %v753_v44 = vadd.f32 0.2548296, %v721_v18  ;;  %v818_v37 = vsub.f32 0.0, %v2204_v27  ;;  %v565_v57 = vadd.f32 -1.4531521, %v533_v29 }
 0x104   :  { %1813 = vrcp.f32 %v470_v0  ;;  %v751_v32 = vadd.f32 0.2548296, %v719_v2 }
 0x105   :  { %v944_v43 = vmul.f32 %v1804_v34, %v784_v17  ;;  %v2256_v47 = vpop.f32.mrb[20].mxu0  ;;  %v785_v10 = vmul.f32 %v2164_v52, %v753_v44  ;;  %v660_v17 = vmul.f32 %v2216_v38, %v628_v45  ;;  %v750_v34 = vadd.f32 0.2548296, %v718_v35  ;;  %v1808_v44 = vpop.eup %1807 }
 0x106   :  { %v2259_v7 = vpop.f32.mrb[21].mxu0  ;;  %v597_v14 = vmul.f32 %v2239_v11, %v565_v57  ;;  %v824_v52 = vsub.f32 0.0, %v2214_v36  ;;  %v850_v45 = vmul.f32 %v818_v37, %v2204_v27  ;;  %1815 = vpow2.f32 %v890_v53  ;;  %v2288_v2 = vpop.eup %1809 }
 0x107   :  { %v976_v39 = vsub.f32 1.0, %v944_v43  ;;  %v2264_v18 = vpop.f32.mrb[22].mxu0  ;;  %v945_v29 = vmul.f32 %v1806_v28, %v785_v10  ;;  %v692_v43 = vadd.f32 -0.28449672, %v660_v17  ;;  %v782_v0 = vmul.f32 %v2151_v42, %v750_v34 }
 0x108   :  { %v2268_v54 = vpop.f32.mrb[23].mxu0  ;;  %v629_v62 = vadd.f32 1.4214138, %v597_v14  ;;  %v2283_v14 = vmul.f32 0.5, %v2129_v23  ;;  %v892_v37 = vmul.f32 1.442695, %v853_v13  ;;  %v856_v61 = vmul.f32 %v824_v52, %v2214_v36  ;;  %v1812_v36 = vpop.eup %1811 }
 0x109   :  { %v1040_v12 = vsub.f32 0.0, %v976_v39  ;;  %v977_v57 = vsub.f32 1.0, %v945_v29  ;;  %v724_v25 = vmul.f32 %v2216_v38, %v692_v43  ;;  %1817 = vrcp.f32 %v466_v22 }
 0x10a   :  { %v661_v10 = vmul.f32 %v2239_v11, %v629_v62  ;;  %v886_v42 = vmul.f32 1.442695, %v850_v45  ;;  %v783_v28 = vmul.f32 %v2178_v5, %v751_v32  ;;  %v435_v34 = vmul.f32 0.3275911, %v403_v46 }
 0x10b   :  { %v1072_v35 = vsel %vm1008_vm1, %v976_v39, %v1040_v12  ;;  %v1041_v27 = vsub.f32 0.0, %v977_v57  ;;  %v756_v23 = vadd.f32 0.2548296, %v724_v25  ;;  %v942_v12 = vmul.f32 %v1808_v44, %v782_v0 }
 0x10c   :  { %v1104_v17 = vadd.f32 1.0, %v1072_v35  ;;  %v693_v53 = vadd.f32 -0.28449672, %v661_v10  ;;  %v536_v43 = vmul.f32 1.0614054, %v2288_v2  ;;  %1819 = vpow2.f32 %v892_v37 }
 0x10d   :  { %v2286_v39 = vpop.f32.mrb[24].mxu0  ;;  %v1073_v33 = vsel %vm1009_vm2, %v977_v57, %v1041_v27  ;;  %v2299_v52 = vmul.f32 0.70710677, %v2280_v21  ;;  %v898_v35 = vmul.f32 1.442695, %v856_v61  ;;  %v2314_v25 = vadd.f32 %v2087_v55, %v2149_v41 }
 0x10e   :  { %v2290_v62 = vpop.f32.mrb[25].mxu0  ;;  %v1105_v29 = vadd.f32 1.0, %v1073_v33  ;;  %v725_v45 = vmul.f32 %v2239_v11, %v693_v53  ;;  %v2304_v5 = vpop.eup %1813  ;;  %v2307_v57 = vmul.f32 %v1104_v17, %v2159_v48  ;;  %v568_v32 = vadd.f32 -1.4531521, %v536_v43 }
 0x10f   :  { %v2295_v13 = vpop.f32.mrb[26].mxu0  ;;  %v943_v0 = vmul.f32 %v1812_v36, %v783_v28  ;;  %v788_v10 = vmul.f32 %v2216_v38, %v756_v23  ;;  %v534_v27 = vmul.f32 1.0614054, %v2304_v5  ;;  %v2320_v37 = vand.u32 2147483647, %v2299_v52 }
 0x110   :  { %v2301_v22 = vpop.f32.mrb[27].mxu0  ;;  %3249 = vst [vmem:[#allocation7_spill] sm:$0xff] %v2307_v57  ;;  %v2310_v44 = vmul.f32 %v1105_v29, %v2167_v56  ;;  %v974_v48 = vsub.f32 1.0, %v942_v12  ;;  %v600_v61 = vmul.f32 %v2288_v2, %v568_v32  ;;  %v822_v17 = vsub.f32 0.0, %v2234_v58  ;;  %v1816_v28 = vpop.eup %1815 }
 0x111   :  { %1821 = vpow2.f32 %v886_v42  ;;  %v757_v41 = vadd.f32 0.2548296, %v725_v45  ;;  %v566_v53 = vadd.f32 -1.4531521, %v534_v27  ;;  %v441_v33 = vmul.f32 0.3275911, %v2320_v37 }
 0x112   :  { %3250 = vst [vmem:[#allocation8_spill] sm:$0xff] %v2310_v44  ;;  %v467_v38 = vadd.f32 1.0, %v435_v34  ;;  %v851_v23 = vmul.f32 %v819_v4, %v403_v46  ;;  %v632_v36 = vadd.f32 1.4214138, %v600_v61  ;;  %v2329_v12 = vmul.f32 0.70710677, %v2314_v25 }
 0x113   :  { %v975_v43 = vsub.f32 1.0, %v943_v0  ;;  %v948_v32 = vmul.f32 %v1816_v28, %v788_v10  ;;  %v598_v56 = vmul.f32 %v2304_v5, %v566_v53  ;;  %v473_v42 = vadd.f32 1.0, %v441_v33  ;;  %v2336_v27 = vpop.eup %1817 }
 0x114   :  { %3252 = vst [vmem:[#allocation10_spill] sm:$0xff] %v2336_v27  ;;  %v1038_v40 = vsub.f32 0.0, %v974_v48  ;;  %v664_v57 = vmul.f32 %v2288_v2, %v632_v36  ;;  %v2340_v46 = vand.u32 2147483647, %v2329_v12  ;;  %v2344_v34 = vadd.f32 %v2169_v60, %v2087_v55 }
 0x115   :  { %v2331_v29 = vpop.f32.mrb[28].mxu0  ;;  %v789_v0 = vmul.f32 %v2239_v11, %v757_v41  ;;  %v630_v10 = vadd.f32 1.4214138, %v598_v56  ;;  %v854_v61 = vmul.f32 %v822_v17, %v2234_v58  ;;  %1823 = vrcp.f32 %v473_v42 }
 0x116   :  { %v2334_v45 = vpop.f32.mrb[29].mxu0  ;;  %1825 = vrcp.f32 %v467_v38  ;;  %v696_v33 = vadd.f32 -0.28449672, %v664_v57  ;;  %v439_v28 = vmul.f32 0.3275911, %v2340_v46  ;;  %v1820_v36 = vpop.eup %1819  ;;  %v1039_v27 = vsub.f32 0.0, %v975_v43 }
 0x117   :  { %3251 = vst [vmem:[#allocation9_spill] sm:$0xff] %v2334_v45  ;;  %v2346_v4 = vpop.f32.mrb[30].mxu0  ;;  %v980_v60 = vsub.f32 1.0, %v948_v32  ;;  %v888_v44 = vmul.f32 1.442695, %v851_v23  ;;  %v1070_v11 = vsel %vm1006_vm3, %v974_v48, %v1038_v40  ;;  %1827 = vpow2.f32 %v898_v35 }
 0x118   :  { %3253 = vst [vmem:[#allocation11_spill] sm:$0xff] %v2346_v4  ;;  %v2350_v53 = vpop.f32.mrb[31].mxu0  ;;  %v662_v4 = vmul.f32 %v2304_v5, %v630_v10  ;;  %v471_v58 = vadd.f32 1.0, %v439_v28  ;;  %v2358_v56 = vmul.f32 0.70710677, %v2344_v34  ;;  %v949_v17 = vmul.f32 %v1820_v36, %v789_v0 }
 0x119   :  { %3254 = vst [vmem:[#allocation12_spill] sm:$0xff] %v2350_v53  ;;  %v728_v41 = vmul.f32 %v2288_v2, %v696_v33  ;;  %v894_v57 = vmul.f32 1.442695, %v854_v61  ;;  %v2363_v38 = vadd.f32 %v2087_v55, %v2176_v59  ;;  %v2366_v23 = vmul.f32 0.5, %v2185_v8 }
 0x11a   :  { %v694_v32 = vadd.f32 -0.28449672, %v662_v4  ;;  %1829 = vrcp.f32 %v471_v58  ;;  %v2369_v1 = vand.u32 2147483647, %v2358_v56  ;;  %v1071_v35 = vsel %vm1007_vm4, %v975_v43, %v1039_v27 }
 0x11b   :  { %v2371_v40 = vpop.eup %1821  ;;  %v1044_v48 = vsub.f32 0.0, %v980_v60  ;;  %1831 = vpow2.f32 %v888_v44  ;;  %v825_v42 = vsub.f32 0.0, %v2320_v37  ;;  %v1102_v0 = vadd.f32 1.0, %v1070_v11 }
 0x11c   :  { %3255 = vst [vmem:[#allocation13_spill] sm:$0xff] %v2371_v40  ;;  %v2378_v59 = vmul.f32 0.5, %v2207_v19  ;;  %v444_v8 = vmul.f32 0.3275911, %v2369_v1  ;;  %v2382_v4 = vmul.f32 0.70710677, %v2363_v38  ;;  %1833 = vpow2.f32 %v894_v57 }
 0x11d   :  { %v981_v10 = vsub.f32 1.0, %v949_v17  ;;  %v760_v61 = vadd.f32 0.2548296, %v728_v41  ;;  %v1103_v44 = vadd.f32 1.0, %v1071_v35  ;;  %v726_v43 = vmul.f32 %v2304_v5, %v694_v32 }
 0x11e   :  { %v476_v27 = vadd.f32 1.0, %v444_v8  ;;  %v2390_v33 = vand.u32 2147483647, %v2382_v4  ;;  %v1076_v28 = vsel %vm1012_vm5, %v980_v60, %v1044_v48  ;;  %v2397_v36 = vmul.f32 0.5, %v2280_v21 }
 0x11f   :  { %v2392_v19 = vpop.eup %1823  ;;  %v857_v11 = vmul.f32 %v825_v42, %v2320_v37  ;;  %v2406_v17 = vmul.f32 %v1102_v0, %v2162_v51  ;;  %v823_v57 = vsub.f32 0.0, %v2340_v46  ;;  %v1045_v24 = vsub.f32 0.0, %v981_v10 }
 0x120   :  { %v2403_v58 = vpop.eup %1825  ;;  %v537_v41 = vmul.f32 1.0614054, %v2392_v19  ;;  %1835 = vrcp.f32 %v476_v27  ;;  %v792_v60 = vmul.f32 %v2288_v2, %v760_v61  ;;  %v442_v21 = vmul.f32 0.3275911, %v2390_v33 }
 0x121   :  { %3256 = vst [vmem:[#allocation14_spill] sm:$0xff] %v2403_v58  ;;  %3257 = vst [vmem:[#allocation15_spill] sm:$0xff] %v2406_v17  ;;  %v2413_v37 = vand.u32 2147483647, %v2401_v9  ;;  %v1828_v32 = vpop.eup %1827  ;;  %v2416_v35 = vmul.f32 %v1103_v44, %v2174_v3  ;;  %v1108_v48 = vadd.f32 1.0, %v1076_v28  ;;  %v2421_v27 = vadd.f32 %v2087_v55, %v2194_v15 }
 0x122   :  { %v758_v51 = vadd.f32 0.2548296, %v726_v43  ;;  %v569_v42 = vadd.f32 -1.4531521, %v537_v41  ;;  %v900_v0 = vmul.f32 1.442695, %v857_v11  ;;  %v855_v3 = vmul.f32 %v823_v57, %v2340_v46 }
 0x123   :  { %3258 = vst [vmem:[#allocation16_spill] sm:$0xff] %v2416_v35  ;;  %v474_v8 = vadd.f32 1.0, %v442_v21  ;;  %v445_v40 = vmul.f32 0.3275911, %v2413_v37  ;;  %v2427_v58 = vmul.f32 0.5, %v2314_v25  ;;  %v828_v44 = vsub.f32 0.0, %v2369_v1 }
 0x124   :  { %v2423_v2 = vpop.eup %1829  ;;  %v601_v61 = vmul.f32 %v2392_v19, %v569_v42  ;;  %v1077_v28 = vsel %vm1013_vm6, %v981_v10, %v1045_v24  ;;  %v952_v11 = vmul.f32 %v1828_v32, %v792_v60  ;;  %v2437_v41 = vmul.f32 %v1108_v48, %v2230_v50 }
 0x125   :  { %v2431_v43 = vpop.eup %1831  ;;  %v535_v15 = vmul.f32 1.0614054, %v2423_v2  ;;  %1837 = vrcp.f32 %v474_v8  ;;  %v790_v21 = vmul.f32 %v2304_v5, %v758_v51  ;;  %v477_v42 = vadd.f32 1.0, %v445_v40 }
 0x126   :  { %3259 = vst [vmem:[#allocation17_spill] sm:$0xff] %v2431_v43  ;;  %3260 = vst [vmem:[#allocation18_spill] sm:$0xff] %v2437_v41  ;;  %v633_v25 = vadd.f32 1.4214138, %v601_v61  ;;  %v1834_v53 = vpop.eup %1833  ;;  %1839 = vpow2.f32 %v900_v0  ;;  %v2441_v57 = vmul.f32 0.5, %v2344_v34  ;;  %v1109_v10 = vadd.f32 1.0, %v1077_v28 }
 0x127   :  { %v567_v46 = vadd.f32 -1.4531521, %v535_v15  ;;  %v2444_v26 = vmul.f32 0.70710677, %v2421_v27  ;;  %v896_v60 = vmul.f32 1.442695, %v855_v3  ;;  %v860_v50 = vmul.f32 %v828_v44, %v2369_v1 }
 0x128   :  { %v665_v24 = vmul.f32 %v2392_v19, %v633_v25  ;;  %v984_v32 = vsub.f32 1.0, %v952_v11  ;;  %1841 = vrcp.f32 %v477_v42  ;;  %v950_v48 = vmul.f32 %v1834_v53, %v790_v21 }
 0x129   :  { %v599_v5 = vmul.f32 %v2423_v2, %v567_v46  ;;  %v2451_v40 = vand.u32 2147483647, %v2444_v26  ;;  %v826_v0 = vsub.f32 0.0, %v2390_v33  ;;  %v2458_v8 = vadd.f32 %v2227_v49, %v2087_v55 }
 0x12a   :  { %v2453_v34 = vpop.eup %1835  ;;  %v697_v51 = vadd.f32 -0.28449672, %v665_v24  ;;  %v2464_v44 = vadd.f32 %v2087_v55, %v2236_v63  ;;  %v906_v28 = vmul.f32 1.442695, %v860_v50  ;;  %v2467_v11 = vmul.f32 0.5, %v2363_v38 }
 0x12b   :  { %v631_v1 = vadd.f32 1.4214138, %v599_v5  ;;  %v540_v61 = vmul.f32 1.0614054, %v2453_v34  ;;  %v443_v3 = vmul.f32 0.3275911, %v2451_v40  ;;  %v858_v63 = vmul.f32 %v826_v0, %v2390_v33 }
 0x12c   :  { %v2470_v53 = vmul.f32 0.5, %v2386_v6  ;;  %v2473_v15 = vmul.f32 0.70710677, %v2458_v8  ;;  %v729_v49 = vmul.f32 %v2392_v19, %v697_v51  ;;  %v1048_v46 = vsub.f32 0.0, %v984_v32 }
 0x12d   :  { %v663_v21 = vmul.f32 %v2423_v2, %v631_v1  ;;  %v572_v25 = vadd.f32 -1.4531521, %v540_v61  ;;  %v475_v42 = vadd.f32 1.0, %v443_v3  ;;  %v982_v24 = vsub.f32 1.0, %v950_v48 }
 0x12e   :  { %v2480_v38 = vand.u32 2147483647, %v2473_v15  ;;  %v829_v5 = vsub.f32 0.0, %v2413_v37  ;;  %v2487_v51 = vmul.f32 0.70710677, %v2464_v44  ;;  %v2490_v1 = vmul.f32 %v1109_v10, %v2283_v14 }
 0x12f   :  { %v2482_v6 = vpop.eup %1837  ;;  %v604_v50 = vmul.f32 %v2453_v34, %v572_v25  ;;  %1843 = vrcp.f32 %v475_v42  ;;  %v695_v48 = vadd.f32 -0.28449672, %v663_v21  ;;  %v761_v3 = vadd.f32 0.2548296, %v729_v49 }
 0x130   :  { %3261 = vst [vmem:[#allocation19_spill] sm:$0xff] %v2490_v1  ;;  %v538_v61 = vmul.f32 1.0614054, %v2482_v6  ;;  %v448_v33 = vmul.f32 0.3275911, %v2480_v38  ;;  %v1840_v0 = vpop.eup %1839  ;;  %1845 = vpow2.f32 %v896_v60  ;;  %v1080_v42 = vsel %vm1016_vm7, %v984_v32, %v1048_v46 }
 0x131   :  { %v636_v43 = vadd.f32 1.4214138, %v604_v50  ;;  %v2495_v25 = vand.u32 2147483647, %v2487_v51  ;;  %v1046_v41 = vsub.f32 0.0, %v982_v24  ;;  %v861_v1 = vmul.f32 %v829_v5, %v2413_v37 }
 0x132   :  { %v570_v45 = vadd.f32 -1.4531521, %v538_v61  ;;  %v480_v35 = vadd.f32 1.0, %v448_v33  ;;  %v2499_v14 = vpop.eup %1841  ;;  %v902_v21 = vmul.f32 1.442695, %v858_v63  ;;  %v727_v60 = vmul.f32 %v2423_v2, %v695_v48 }
 0x133   :  { %v668_v10 = vmul.f32 %v2453_v34, %v636_v43  ;;  %v446_v49 = vmul.f32 0.3275911, %v2495_v25  ;;  %v541_v17 = vmul.f32 1.0614054, %v2499_v14  ;;  %v793_v20 = vmul.f32 %v2392_v19, %v761_v3 }
 0x134   :  { %v602_v50 = vmul.f32 %v2482_v6, %v570_v45  ;;  %1847 = vrcp.f32 %v480_v35  ;;  %v827_v46 = vsub.f32 0.0, %v2451_v40  ;;  %v2510_v37 = vmul.f32 0.5, %v2421_v27 }
 0x135   :  { %v700_v32 = vadd.f32 -0.28449672, %v668_v10  ;;  %v478_v61 = vadd.f32 1.0, %v446_v49  ;;  %1849 = vpow2.f32 %v906_v28  ;;  %v573_v63 = vadd.f32 -1.4531521, %v541_v17 }
 0x136   :  { %v634_v43 = vadd.f32 1.4214138, %v602_v50  ;;  %v1112_v5 = vadd.f32 1.0, %v1080_v42  ;;  %v1078_v48 = vsel %vm1014_vm8, %v982_v24, %v1046_v41  ;;  %v908_v33 = vmul.f32 1.442695, %v861_v1 }
 0x137   :  { %v732_v45 = vmul.f32 %v2453_v34, %v700_v32  ;;  %v759_v35 = vadd.f32 0.2548296, %v727_v60  ;;  %v605_v3 = vmul.f32 %v2499_v14, %v573_v63  ;;  %1851 = vrcp.f32 %v478_v61 }
 0x138   :  { %v666_v19 = vmul.f32 %v2482_v6, %v634_v43  ;;  %v953_v28 = vmul.f32 %v1840_v0, %v793_v20  ;;  %1853 = vpow2.f32 %v902_v21  ;;  %v859_v17 = vmul.f32 %v827_v46, %v2451_v40 }
 0x139   :  { %v2517_v10 = vpop.eup %1843  ;;  %v832_v27 = vsub.f32 0.0, %v2480_v38  ;;  %v637_v30 = vadd.f32 1.4214138, %v605_v3  ;;  %v2524_v24 = vadd.f32 %v2245_v16, %v2087_v55  ;;  %v2527_v49 = vmul.f32 %v1112_v5, %v2366_v23 }
 0x13a   :  { %v698_v42 = vadd.f32 -0.28449672, %v666_v19  ;;  %v539_v41 = vmul.f32 1.0614054, %v2517_v10  ;;  %v1846_v1 = vpop.eup %1845  ;;  %v1110_v60 = vadd.f32 1.0, %v1078_v48  ;;  %1855 = vpow2.f32 %v908_v33 }
 0x13b   :  { %v764_v50 = vadd.f32 0.2548296, %v732_v45  ;;  %v791_v0 = vmul.f32 %v2423_v2, %v759_v35  ;;  %v669_v21 = vmul.f32 %v2499_v14, %v637_v30  ;;  %v985_v32 = vsub.f32 1.0, %v953_v28 }
 0x13c   :  { %v730_v40 = vmul.f32 %v2482_v6, %v698_v42  ;;  %v571_v20 = vadd.f32 -1.4531521, %v539_v41  ;;  %vm1017_vm9 = vcmp.ge.f32.partialorder %v2299_v52, 0.0  ;;  %v904_v46 = vmul.f32 1.442695, %v859_v17 }
 0x13d   :  { %v864_v16 = vmul.f32 %v832_v27, %v2480_v38  ;;  %v2535_v61 = vmul.f32 0.70710677, %v2524_v24  ;;  %v701_v63 = vadd.f32 -0.28449672, %v669_v21  ;;  %v830_v5 = vsub.f32 0.0, %v2495_v25 }
 0x13e   :  { %v2537_v23 = vpop.eup %1847  ;;  %v762_v43 = vadd.f32 0.2548296, %v730_v40  ;;  %v603_v2 = vmul.f32 %v2517_v10, %v571_v20  ;;  %v2542_v48 = vmul.f32 %v1110_v60, %v2378_v59  ;;  %v796_v45 = vmul.f32 %v2453_v34, %v764_v50 }
 0x13f   :  { %v544_v33 = vmul.f32 1.0614054, %v2537_v23  ;;  %v417_v38 = vand.u32 2147483647, %v2535_v61  ;;  %v1850_v35 = vpop.eup %1849  ;;  %v951_v19 = vmul.f32 %v1846_v1, %v791_v0  ;;  %v733_v28 = vmul.f32 %v2499_v14, %v701_v63 }
 0x140   :  { %v794_v3 = vmul.f32 %v2482_v6, %v762_v43  ;;  %v635_v17 = vadd.f32 1.4214138, %v603_v2  ;;  %1857 = vpow2.f32 %v904_v46  ;;  %v914_v42 = vmul.f32 1.442695, %v864_v16 }
 0x141   :  { %v576_v27 = vadd.f32 -1.4531521, %v544_v33  ;;  %v449_v30 = vmul.f32 0.3275911, %v417_v38  ;;  %v2549_v41 = vpop.eup %1851  ;;  %v1049_v59 = vsub.f32 0.0, %v985_v32  ;;  %v862_v50 = vmul.f32 %v830_v5, %v2495_v25 }
 0x142   :  { %v765_v60 = vadd.f32 0.2548296, %v733_v28  ;;  %v667_v34 = vmul.f32 %v2517_v10, %v635_v17  ;;  %v1854_v40 = vpop.eup %1853  ;;  %vm1015_vm10 = vcmp.ge.f32.partialorder %v2329_v12, 0.0  ;;  %v956_v1 = vmul.f32 %v1850_v35, %v796_v45 }
 0x143   :  { %v608_v6 = vmul.f32 %v2537_v23, %v576_v27  ;;  %v542_v0 = vmul.f32 1.0614054, %v2549_v41  ;;  %v481_v21 = vadd.f32 1.0, %v449_v30  ;;  %v983_v20 = vsub.f32 1.0, %v951_v19 }
 0x144   :  { %v954_v46 = vmul.f32 %v1854_v40, %v794_v3  ;;  %v699_v16 = vadd.f32 -0.28449672, %v667_v34  ;;  %v2558_v43 = vadd.f32 %v2087_v55, %v2250_v31  ;;  %v1856_v63 = vpop.eup %1855  ;;  %v797_v2 = vmul.f32 %v2499_v14, %v765_v60 }
 0x145   :  { %v640_v25 = vadd.f32 1.4214138, %v608_v6  ;;  %v574_v5 = vadd.f32 -1.4531521, %v542_v0  ;;  %1859 = vrcp.f32 %v481_v21  ;;  %v1081_v45 = vsel %vm1017_vm9, %v985_v32, %v1049_v59 }
 0x146   :  { %vm1020_vm11 = vcmp.ge.f32.partialorder %v2358_v56, 0.0  ;;  %v731_v33 = vmul.f32 %v2517_v10, %v699_v16  ;;  %v2566_v35 = vmul.f32 0.5, %v2458_v8  ;;  %1861 = vpow2.f32 %v914_v42 }
 0x147   :  { %v988_v19 = vsub.f32 1.0, %v956_v1  ;;  %v672_v31 = vmul.f32 %v2537_v23, %v640_v25  ;;  %v606_v3 = vmul.f32 %v2549_v41, %v574_v5  ;;  %v910_v14 = vmul.f32 1.442695, %v862_v50 }
 0x148   :  { %v1047_v28 = vsub.f32 0.0, %v983_v20  ;;  %vm1018_vm12 = vcmp.ge.f32.partialorder %v2382_v4, 0.0  ;;  %v763_v17 = vadd.f32 0.2548296, %v731_v33  ;;  %v833_v52 = vsub.f32 0.0, %v417_v38 }
 0x149   :  { %v2572_v32 = vmul.f32 0.70710677, %v2558_v43  ;;  %v986_v27 = vsub.f32 1.0, %v954_v46  ;;  %v957_v30 = vmul.f32 %v1856_v63, %v797_v2  ;;  %v704_v59 = vadd.f32 -0.28449672, %v672_v31 }
 0x14a   :  { %v638_v8 = vadd.f32 1.4214138, %v606_v3  ;;  %v1113_v60 = vadd.f32 1.0, %v1081_v45  ;;  %v795_v42 = vmul.f32 %v2517_v10, %v763_v17  ;;  %v2576_v34 = vmul.f32 0.5, %v2464_v44  ;;  %v1858_v40 = vpop.eup %1857 }
 0x14b   :  { %v415_v50 = vand.u32 2147483647, %v2572_v32  ;;  %v1052_v1 = vsub.f32 0.0, %v988_v19  ;;  %v736_v6 = vmul.f32 %v2537_v23, %v704_v59  ;;  %v296_v21 = vadd.f32 %v2256_v47, %v2087_v55 }
 0x14c   :  { %v670_v0 = vmul.f32 %v2549_v41, %v638_v8  ;;  %v1079_v46 = vsel %vm1015_vm10, %v983_v20, %v1047_v28  ;;  %1863 = vpow2.f32 %v910_v14  ;;  %v865_v10 = vmul.f32 %v833_v52, %v417_v38 }
 0x14d   :  { %v447_v44 = vmul.f32 0.3275911, %v415_v50  ;;  %v1050_v16 = vsub.f32 0.0, %v986_v27  ;;  %v989_v63 = vsub.f32 1.0, %v957_v30  ;;  %v768_v2 = vadd.f32 0.2548296, %v736_v6 }
 0x14e   :  { %v702_v25 = vadd.f32 -0.28449672, %v670_v0  ;;  %v2587_v5 = vmul.f32 %v1113_v60, %v2397_v36  ;;  %v955_v45 = vmul.f32 %v1858_v40, %v795_v42  ;;  %v2589_v31 = vmul.f32 0.70710677, %v296_v21  ;;  %v2601_v36 = vld [vmem:[%s3232_s2] ss:$0 sm:$0xff] }
 0x14f   :  { %v479_v33 = vadd.f32 1.0, %v447_v44  ;;  %v2591_v55 = vpop.eup %1859  ;;  %v1111_v47 = vadd.f32 1.0, %v1079_v46  ;;  %v1084_v12 = vsel %vm1020_vm11, %v988_v19, %v1052_v1  ;;  %v800_v38 = vmul.f32 %v2537_v23, %v768_v2 }
 0x150   :  { %v734_v20 = vmul.f32 %v2549_v41, %v702_v25  ;;  %v1862_v3 = vpop.eup %1861  ;;  %v545_v14 = vmul.f32 1.0614054, %v2591_v55  ;;  %v916_v28 = vmul.f32 1.442695, %v865_v10  ;;  %v288_v17 = vadd.f32 %v2601_v36, %v2259_v7 }
 0x151   :  { %1865 = vrcp.f32 %v479_v33  ;;  %v1082_v56 = vsel %vm1018_vm12, %v986_v27, %v1050_v16  ;;  %v1053_v19 = vsub.f32 0.0, %v989_v63  ;;  %vm1019_vm14 = vcmp.ge.f32.partialorder %v2444_v26, 0.0 }
 0x152   :  { %v766_v23 = vadd.f32 0.2548296, %v734_v20  ;;  %v420_v52 = vand.u32 2147483647, %v2589_v31  ;;  %v987_v30 = vsub.f32 1.0, %v955_v45  ;;  %v2610_v59 = vmul.f32 0.5, %v2524_v24 }
 0x153   :  { %v577_v8 = vadd.f32 -1.4531521, %v545_v14  ;;  %v831_v60 = vsub.f32 0.0, %v415_v50  ;;  %v2613_v42 = vmul.f32 %v1111_v47, %v2427_v58  ;;  %v1116_v40 = vadd.f32 1.0, %v1084_v12 }
 0x154   :  { %v960_v7 = vmul.f32 %v1862_v3, %v800_v38  ;;  %v452_v1 = vmul.f32 0.3275911, %v420_v52  ;;  %v1114_v4 = vadd.f32 1.0, %v1082_v56  ;;  %v798_v27 = vmul.f32 %v2549_v41, %v766_v23 }
 0x155   :  { %v609_v6 = vmul.f32 %v2591_v55, %v577_v8  ;;  %v2617_v0 = vmul.f32 0.70710677, %v288_v17  ;;  %v1085_v46 = vsel %vm1021_vm13, %v989_v63, %v1053_v19  ;;  %1867 = vpow2.f32 %v916_v28 }
 0x156   :  { %v484_v24 = vadd.f32 1.0, %v452_v1  ;;  %v299_v10 = vadd.f32 %v2601_v36, %v2264_v18  ;;  %v1864_v58 = vpop.eup %1863  ;;  %v1051_v44 = vsub.f32 0.0, %v987_v30  ;;  %vm1024_vm15 = vcmp.ge.f32.partialorder %v2473_v15, 0.0 }
 0x157   :  { %v641_v16 = vadd.f32 1.4214138, %v609_v6  ;;  %v863_v2 = vmul.f32 %v831_v60, %v415_v50  ;;  %v418_v41 = vand.u32 2147483647, %v2617_v0  ;;  %v2626_v25 = vmul.f32 %v1116_v40, %v2441_v57 }
 0x158   :  { %v992_v45 = vsub.f32 1.0, %v960_v7  ;;  %v2629_v9 = vmul.f32 0.5, %v2558_v43  ;;  %1869 = vrcp.f32 %v484_v24  ;;  %v958_v63 = vmul.f32 %v1864_v58, %v798_v27 }
 0x159   :  { %v673_v33 = vmul.f32 %v2591_v55, %v641_v16  ;;  %v836_v18 = vsub.f32 0.0, %v420_v52  ;;  %v450_v47 = vmul.f32 0.3275911, %v418_v41  ;;  %v2633_v12 = vmul.f32 %v1114_v4, %v2467_v11 }
 0x15a   :  { %v1117_v38 = vadd.f32 1.0, %v1085_v46  ;;  %v2635_v50 = vmul.f32 0.5, %v296_v21  ;;  %v2637_v20 = vmul.f32 0.70710677, %v299_v10  ;;  %v1083_v43 = vsel %vm1019_vm14, %v987_v30, %v1051_v44 }
 0x15b   :  { %v2639_v57 = vpop.eup %1865  ;;  %v705_v3 = vadd.f32 -0.28449672, %v673_v33  ;;  %v912_v14 = vmul.f32 1.442695, %v863_v2  ;;  %v482_v28 = vadd.f32 1.0, %v450_v47  ;;  %v1056_v56 = vsub.f32 0.0, %v992_v45 }
 0x15c   :  { %v543_v19 = vmul.f32 1.0614054, %v2639_v57  ;;  %v421_v23 = vand.u32 2147483647, %v2637_v20  ;;  %v291_v11 = vadd.f32 %v2601_v36, %v2268_v54  ;;  %v990_v21 = vsub.f32 1.0, %v958_v63 }
 0x15d   :  { %vm1022_vm1 = vcmp.ge.f32.partialorder %v2487_v51, 0.0  ;;  %v737_v8 = vmul.f32 %v2591_v55, %v705_v3  ;;  %v868_v60 = vmul.f32 %v836_v18, %v420_v52  ;;  %1871 = vrcp.f32 %v482_v28 }
 0x15e   :  { %v2650_v26 = vmul.f32 %v1117_v38, %v2470_v53  ;;  %v575_v30 = vadd.f32 -1.4531521, %v543_v19  ;;  %v453_v40 = vmul.f32 0.3275911, %v421_v23  ;;  %v2654_v7 = vadd.f32 %v2601_v36, %v2286_v39 }
 0x15f   :  { %v1115_v1 = vadd.f32 1.0, %v1083_v43  ;;  %v769_v4 = vadd.f32 0.2548296, %v737_v8  ;;  %1873 = vpow2.f32 %v912_v14  ;;  %v2656_v54 = vmul.f32 0.5, %v288_v17  ;;  %v1868_v27 = vpop.eup %1867 }
 0x160   :  { %v1088_v6 = vsel %vm1024_vm15, %v992_v45, %v1056_v56  ;;  %v607_v52 = vmul.f32 %v2639_v57, %v575_v30  ;;  %v485_v46 = vadd.f32 1.0, %v453_v40  ;;  %v2661_v53 = vmul.f32 0.70710677, %v291_v11 }
 0x161   :  { %v1054_v24 = vsub.f32 0.0, %v990_v21  ;;  %v922_v58 = vmul.f32 1.442695, %v868_v60  ;;  %v834_v44 = vsub.f32 0.0, %v418_v41  ;;  %v2664_v39 = vmul.f32 0.70710677, %v2654_v7 }
 0x162   :  { %v2666_v16 = vpop.eup %1869  ;;  %v801_v17 = vmul.f32 %v2591_v55, %v769_v4  ;;  %v639_v2 = vadd.f32 1.4214138, %v607_v52  ;;  %1875 = vrcp.f32 %v485_v46  ;;  %v419_v15 = vand.u32 2147483647, %v2661_v53 }
 0x163   :  { %v2671_v45 = vmul.f32 %v1115_v1, %v2510_v37  ;;  %v548_v63 = vmul.f32 1.0614054, %v2666_v16  ;;  %v837_v33 = vsub.f32 0.0, %v421_v23  ;;  %v424_v18 = vand.u32 2147483647, %v2664_v39 }
 0x164   :  { %v1120_v47 = vadd.f32 1.0, %v1088_v6  ;;  %v671_v38 = vmul.f32 %v2639_v57, %v639_v2  ;;  %v2676_v43 = vmul.f32 0.5, %v299_v10  ;;  %v451_v3 = vmul.f32 0.3275911, %v419_v15 }
 0x165   :  { %v580_v14 = vadd.f32 -1.4531521, %v548_v63  ;;  %1877 = vpow2.f32 %v922_v58  ;;  %v866_v55 = vmul.f32 %v834_v44, %v418_v41  ;;  %v456_v28 = vmul.f32 0.3275911, %v424_v18 }
 0x166   :  { %v1086_v56 = vsel %vm1022_vm1, %v990_v21, %v1054_v24  ;;  %v961_v37 = vmul.f32 %v1868_v27, %v801_v17  ;;  %v703_v19 = vadd.f32 -0.28449672, %v671_v38  ;;  %v483_v8 = vadd.f32 1.0, %v451_v3 }
 0x167   :  { %v2680_v60 = vpop.eup %1871  ;;  %v612_v30 = vmul.f32 %v2666_v16, %v580_v14  ;;  %v869_v40 = vmul.f32 %v837_v33, %v421_v23  ;;  %v488_v1 = vadd.f32 1.0, %v456_v28  ;;  %v2685_v10 = vadd.f32 %v2601_v36, %v2290_v62 }
 0x168   :  { %v2688_v4 = vmul.f32 %v1120_v47, %v2566_v35  ;;  %v735_v41 = vmul.f32 %v2639_v57, %v703_v19  ;;  %v546_v51 = vmul.f32 1.0614054, %v2680_v60  ;;  %1879 = vrcp.f32 %v483_v8 }
 0x169   :  { %v1874_v21 = vpop.eup %1873  ;;  %v1118_v27 = vadd.f32 1.0, %v1086_v56  ;;  %vm1025_vm2 = vcmp.ge.f32.partialorder %v2535_v61, 0.0  ;;  %v644_v6 = vadd.f32 1.4214138, %v612_v30  ;;  %v918_v52 = vmul.f32 1.442695, %v866_v55 }
 0x16a   :  { %1881 = vrcp.f32 %v488_v1  ;;  %v993_v23 = vsub.f32 1.0, %v961_v37  ;;  %v767_v46 = vadd.f32 0.2548296, %v735_v41  ;;  %v578_v24 = vadd.f32 -1.4531521, %v546_v51 }
 0x16b   :  { %v2693_v62 = vmul.f32 0.5, %v291_v11  ;;  %v676_v35 = vmul.f32 %v2666_v16, %v644_v6  ;;  %v924_v58 = vmul.f32 1.442695, %v869_v40  ;;  %v835_v44 = vsub.f32 0.0, %v419_v15 }
 0x16c   :  { %v2697_v17 = vmul.f32 0.70710677, %v2685_v10  ;;  %v2699_v2 = vpop.eup %1875  ;;  %v799_v63 = vmul.f32 %v2639_v57, %v767_v46  ;;  %v610_v33 = vmul.f32 %v2680_v60, %v578_v24  ;;  %v840_v47 = vsub.f32 0.0, %v424_v18 }
 0x16d   :  { %v2705_v38 = vadd.f32 %v2601_v36, %v2295_v13  ;;  %v2708_v11 = vmul.f32 %v1118_v27, %v2576_v34  ;;  %v708_v3 = vadd.f32 -0.28449672, %v676_v35  ;;  %v549_v14 = vmul.f32 1.0614054, %v2699_v2 }
 0x16e   :  { %v422_v55 = vand.u32 2147483647, %v2697_v17  ;;  %v1057_v28 = vsub.f32 0.0, %v993_v23  ;;  %v642_v56 = vadd.f32 1.4214138, %v610_v33  ;;  %1883 = vpow2.f32 %v918_v52 }
 0x16f   :  { %v2713_v57 = vmul.f32 0.5, %v2654_v7  ;;  %v1878_v37 = vpop.eup %1877  ;;  %v740_v19 = vmul.f32 %v2666_v16, %v708_v3  ;;  %v581_v8 = vadd.f32 -1.4531521, %v549_v14  ;;  %1885 = vpow2.f32 %v924_v58 }
 0x170   :  { %v454_v13 = vmul.f32 0.3275911, %v422_v55  ;;  %v959_v30 = vmul.f32 %v1874_v21, %v799_v63  ;;  %v674_v34 = vmul.f32 %v2680_v60, %v642_v56  ;;  %v867_v40 = vmul.f32 %v835_v44, %v419_v15 }
 0x171   :  { %v2718_v1 = vmul.f32 0.70710677, %v2705_v38  ;;  %v772_v41 = vadd.f32 0.2548296, %v740_v19  ;;  %v613_v51 = vmul.f32 %v2699_v2, %v581_v8  ;;  %v872_v27 = vmul.f32 %v840_v47, %v424_v18 }
 0x172   :  { %v486_v6 = vadd.f32 1.0, %v454_v13  ;;  %v2721_v7 = vpop.eup %1879  ;;  %v1089_v52 = vsel %vm1025_vm2, %v993_v23, %v1057_v28  ;;  %v706_v46 = vadd.f32 -0.28449672, %v674_v34  ;;  %v838_v24 = vsub.f32 0.0, %v422_v55 }
 0x173   :  { %v2726_v21 = vand.u32 2147483647, %v2718_v1  ;;  %vm1023_vm3 = vcmp.ge.f32.partialorder %v2572_v32, 0.0  ;;  %v804_v15 = vmul.f32 %v2666_v16, %v772_v41  ;;  %v645_v58 = vadd.f32 1.4214138, %v613_v51 }
 0x174   :  { %v2728_v35 = vpop.eup %1881  ;;  %v547_v18 = vmul.f32 1.0614054, %v2721_v7  ;;  %1887 = vrcp.f32 %v486_v6  ;;  %v991_v44 = vsub.f32 1.0, %v959_v30  ;;  %v738_v63 = vmul.f32 %v2680_v60, %v706_v46 }
 0x175   :  { %v920_v61 = vmul.f32 1.442695, %v867_v40  ;;  %v552_v23 = vmul.f32 1.0614054, %v2728_v35  ;;  %v1121_v33 = vadd.f32 1.0, %v1089_v52  ;;  %v677_v47 = vmul.f32 %v2699_v2, %v645_v58 }
 0x176   :  { %v579_v3 = vadd.f32 -1.4531521, %v547_v18  ;;  %v930_v14 = vmul.f32 1.442695, %v872_v27  ;;  %v964_v28 = vmul.f32 %v1878_v37, %v804_v15  ;;  %v770_v56 = vadd.f32 0.2548296, %v738_v63 }
 0x177   :  { %v584_v19 = vadd.f32 -1.4531521, %v552_v23  ;;  %v457_v16 = vmul.f32 0.3275911, %v2726_v21  ;;  %v709_v8 = vadd.f32 -0.28449672, %v677_v47  ;;  %v870_v34 = vmul.f32 %v838_v24, %v422_v55 }
 0x178   :  { %v611_v13 = vmul.f32 %v2721_v7, %v579_v3  ;;  %v2740_v30 = vadd.f32 %v2601_v36, %v2301_v22  ;;  %v1884_v40 = vpop.eup %1883  ;;  %v1055_v41 = vsub.f32 0.0, %v991_v44  ;;  %v802_v51 = vmul.f32 %v2680_v60, %v770_v56 }
 0x179   :  { %v616_v6 = vmul.f32 %v2728_v35, %v584_v19  ;;  %v489_v27 = vadd.f32 1.0, %v457_v16  ;;  %v1886_v37 = vpop.eup %1885  ;;  %vm1028_vm4 = vcmp.ge.f32.partialorder %v2589_v31, 0.0  ;;  %v741_v52 = vmul.f32 %v2699_v2, %v709_v8 }
 0x17a   :  { %v643_v46 = vadd.f32 1.4214138, %v611_v13  ;;  %1889 = vpow2.f32 %v920_v61  ;;  %v2747_v55 = vmul.f32 0.5, %v2685_v10  ;;  %v996_v24 = vsub.f32 1.0, %v964_v28 }
 0x17b   :  { %v962_v22 = vmul.f32 %v1884_v40, %v802_v51  ;;  %vm1026_vm5 = vcmp.ge.f32.partialorder %v2617_v0, 0.0  ;;  %v648_v15 = vadd.f32 1.4214138, %v616_v6  ;;  %1891 = vrcp.f32 %v489_v27 }
 0x17c   :  { %v773_v60 = vadd.f32 0.2548296, %v741_v52  ;;  %v675_v58 = vmul.f32 %v2721_v7, %v643_v46  ;;  %1893 = vpow2.f32 %v930_v14  ;;  %v2752_v18 = vmul.f32 0.70710677, %v2740_v30 }
 0x17d   :  { %v1087_v63 = vsel %vm1023_vm3, %v991_v44, %v1055_v41  ;;  %v994_v61 = vsub.f32 1.0, %v962_v22  ;;  %v680_v10 = vmul.f32 %v2728_v35, %v648_v15  ;;  %v926_v23 = vmul.f32 1.442695, %v870_v34 }
 0x17e   :  { %v2757_v47 = vpop.eup %1887  ;;  %v805_v3 = vmul.f32 %v2699_v2, %v773_v60  ;;  %v707_v28 = vadd.f32 -0.28449672, %v675_v58  ;;  %v841_v56 = vsub.f32 0.0, %v2726_v21  ;;  %v423_v19 = vand.u32 2147483647, %v2752_v18 }
 0x17f   :  { %v2763_v14 = vmul.f32 %v1121_v33, %v2610_v59  ;;  %v1060_v16 = vsub.f32 0.0, %v996_v24  ;;  %v712_v8 = vadd.f32 -0.28449672, %v680_v10  ;;  %v550_v32 = vmul.f32 1.0614054, %v2757_v47 }
 0x180   :  { %v1058_v44 = vsub.f32 0.0, %v994_v61  ;;  %v739_v13 = vmul.f32 %v2721_v7, %v707_v28  ;;  %v2768_v34 = vmul.f32 0.5, %v2705_v38  ;;  %v455_v40 = vmul.f32 0.3275911, %v423_v19 }
 0x181   :  { %v1119_v2 = vadd.f32 1.0, %v1087_v63  ;;  %v965_v41 = vmul.f32 %v1886_v37, %v805_v3  ;;  %v744_v51 = vmul.f32 %v2728_v35, %v712_v8  ;;  %v582_v6 = vadd.f32 -1.4531521, %v550_v32 }
 0x182   :  { %v771_v27 = vadd.f32 0.2548296, %v739_v13  ;;  %1895 = vpow2.f32 %v926_v23  ;;  %v873_v59 = vmul.f32 %v841_v56, %v2726_v21  ;;  %v487_v33 = vadd.f32 1.0, %v455_v40 }
 0x183   :  { %v1092_v52 = vsel %vm1028_vm4, %v996_v24, %v1060_v16  ;;  %v776_v46 = vadd.f32 0.2548296, %v744_v51  ;;  %v614_v22 = vmul.f32 %v2757_v47, %v582_v6  ;;  %v2777_v38 = vadd.f32 %v2601_v36, %v2331_v29 }
 0x184   :  { %v1890_v15 = vpop.eup %1889  ;;  %v1090_v37 = vsel %vm1026_vm5, %v994_v61, %v1058_v44  ;;  %vm1029_vm6 = vcmp.ge.f32.partialorder %v2637_v20, 0.0  ;;  %v803_v60 = vmul.f32 %v2721_v7, %v771_v27  ;;  %1897 = vrcp.f32 %v487_v33 }
 0x185   :  { %v839_v21 = vsub.f32 0.0, %v423_v19  ;;  %v2783_v58 = vpop.eup %1891  ;;  %v2786_v31 = vmul.f32 %v1119_v2, %v2629_v9  ;;  %v997_v24 = vsub.f32 1.0, %v965_v41  ;;  %vm1027_vm7 = vcmp.ge.f32.partialorder %v2661_v53, 0.0  ;;  %v3262_v2 = vld [vmem:[#allocation15_spill] sm:$0xff]  ;;  %v3263_v41 = vld [vmem:[#allocation16_spill] sm:$0xff] }
 0x186   :  { %v808_v29 = vmul.f32 %v2728_v35, %v776_v46  ;;  %v646_v63 = vadd.f32 1.4214138, %v614_v22  ;;  %v1894_v10 = vpop.eup %1893  ;;  %v1124_v0 = vadd.f32 1.0, %v1092_v52  ;;  %v963_v61 = vmul.f32 %v1890_v15, %v803_v60  ;;  %v3264_v22 = vld [vmem:[#allocation9_spill] sm:$0xff] }
 0x187   :  { %vm1032_vm8 = vcmp.ge.f32.partialorder %v2664_v39, 0.0  ;;  %v553_v7 = vmul.f32 1.0614054, %v2783_v58  ;;  %v2793_v23 = vmul.f32 0.70710677, %v2777_v38  ;;  %v1122_v3 = vadd.f32 1.0, %v1090_v37 }
 0x188   :  { %v968_v28 = vmul.f32 %v1894_v10, %v808_v29  ;;  %v678_v9 = vmul.f32 %v2757_v47, %v646_v63  ;;  %v932_v56 = vmul.f32 1.442695, %v873_v59  ;;  %v995_v16 = vsub.f32 1.0, %v963_v61  ;;  %v3265_v10 = vld [vmem:[#allocation8_spill] sm:$0xff] }
 0x189   :  { %v585_v8 = vadd.f32 -1.4531521, %v553_v7  ;;  %v871_v32 = vmul.f32 %v839_v21, %v423_v19  ;;  %v428_v35 = vand.u32 2147483647, %v2793_v23  ;;  %v1061_v44 = vsub.f32 0.0, %v997_v24 }
 0x18a   :  { %v1000_v13 = vsub.f32 1.0, %v968_v28  ;;  %v710_v40 = vadd.f32 -0.28449672, %v678_v9  ;;  %v1198_v51 = vpack.c.bf16 %v3263_v41, %v3262_v2  ;;  %v1059_v6 = vsub.f32 0.0, %v995_v16 }
 0x18b   :  { %v617_v27 = vmul.f32 %v2783_v58, %v585_v8  ;;  %v2801_v33 = vmul.f32 0.5, %v2740_v30  ;;  %v460_v52 = vmul.f32 0.3275911, %v428_v35  ;;  %v2804_v59 = vmul.f32 %v1124_v0, %v2635_v50  ;;  %v3266_v30 = vld [vmem:[#allocation7_spill] sm:$0xff] }
 0x18c   :  { %v1064_v46 = vsub.f32 0.0, %v1000_v13  ;;  %v742_v19 = vmul.f32 %v2757_v47, %v710_v40  ;;  %1732 = vmatprep.mubr.bf16.mxu0 %v1198_v51  ;;  %v2809_v15 = vadd.f32 %v2601_v36, %v3264_v22  ;;  %v1896_v37 = vpop.eup %1895  ;;  %v928_v21 = vmul.f32 1.442695, %v871_v32  ;;  %v3268_v32 = vld [vmem:[#allocation11_spill] sm:$0xff] }
 0x18d   :  { %v649_v60 = vadd.f32 1.4214138, %v617_v27  ;;  %v492_v29 = vadd.f32 1.0, %v460_v52  ;;  %v844_v63 = vsub.f32 0.0, %v428_v35  ;;  %v3267_v61 = vpack.c.bf16 %v3265_v10, %v3266_v30 }
 0x18e   :  { %v2815_v50 = vmul.f32 %v1122_v3, %v2656_v54  ;;  %v1093_v0 = vsel %vm1029_vm6, %v997_v24, %v1061_v44  ;;  %v774_v7 = vadd.f32 0.2548296, %v742_v19  ;;  %1899 = vpow2.f32 %v932_v56  ;;  %v2819_v28 = vpop.eup %1897 }
 0x18f   :  { %1733 = vmatmul.mubr.bf16.vlgmr.msra.gmra.mrb[32].mxu0 %v3267_v61  ;;  %v1091_v9 = vsel %vm1027_vm7, %v995_v16, %v1059_v6  ;;  %vm1030_vm9 = vcmp.ge.f32.partialorder %v2697_v17, 0.0  ;;  %v681_v8 = vmul.f32 %v2783_v58, %v649_v60  ;;  %1901 = vrcp.f32 %v492_v29 }
 0x190   :  { %v2827_v40 = vadd.f32 %v2601_v36, %v3268_v32  ;;  %v1096_v20 = vsel %vm1032_vm8, %v1000_v13, %v1064_v46  ;;  %v806_v54 = vmul.f32 %v2757_v47, %v774_v7  ;;  %v551_v24 = vmul.f32 1.0614054, %v2819_v28  ;;  %v3269_v47 = vld [vmem:[#allocation12_spill] sm:$0xff] }
 0x191   :  { %v2834_v3 = vmul.f32 0.70710677, %v2809_v15  ;;  %v1125_v53 = vadd.f32 1.0, %v1093_v0  ;;  %v713_v56 = vadd.f32 -0.28449672, %v681_v8  ;;  %1903 = vpow2.f32 %v928_v21 }
 0x192   :  { %v876_v16 = vmul.f32 %v844_v63, %v428_v35  ;;  %v1123_v44 = vadd.f32 1.0, %v1091_v9  ;;  %v966_v2 = vmul.f32 %v1896_v37, %v806_v54  ;;  %v583_v41 = vadd.f32 -1.4531521, %v551_v24 }
 0x193   :  { %v426_v51 = vand.u32 2147483647, %v2834_v3  ;;  %v1128_v6 = vadd.f32 1.0, %v1096_v20  ;;  %v745_v39 = vmul.f32 %v2783_v58, %v713_v56  ;;  %v2839_v13 = vmul.f32 0.70710677, %v2827_v40 }
 0x194   :  { %v2843_v27 = vadd.f32 %v2601_v36, %v3269_v47  ;;  %v998_v52 = vsub.f32 1.0, %v966_v2  ;;  %v615_v46 = vmul.f32 %v2819_v28, %v583_v41  ;;  %v2847_v22 = vmul.f32 %v1125_v53, %v2676_v43  ;;  %v3270_v41 = vld [vmem:[#allocation10_spill] sm:$0xff] }
 0x195   :  { %v458_v19 = vmul.f32 0.3275911, %v426_v51  ;;  %v842_v35 = vsub.f32 0.0, %v426_v51  ;;  %v777_v37 = vadd.f32 0.2548296, %v745_v39  ;;  %vm1033_vm10 = vcmp.ge.f32.partialorder %v2718_v1, 0.0 }
 0x196   :  { %v938_v60 = vmul.f32 1.442695, %v876_v16  ;;  %v429_v21 = vand.u32 2147483647, %v2839_v13  ;;  %v1062_v29 = vsub.f32 0.0, %v998_v52  ;;  %v2852_v36 = vmul.f32 %v1123_v44, %v2693_v62 }
 0x197   :  { %v647_v63 = vadd.f32 1.4214138, %v615_v46  ;;  %v490_v10 = vadd.f32 1.0, %v458_v19  ;;  %v874_v30 = vmul.f32 %v842_v35, %v426_v51  ;;  %v809_v61 = vmul.f32 %v2783_v58, %v777_v37  ;;  %v3271_v37 = vld [vmem:[#allocation14_spill] sm:$0xff] }
 0x198   :  { %v461_v0 = vmul.f32 0.3275911, %v429_v21  ;;  %v2856_v7 = vmul.f32 0.70710677, %v2843_v27  ;;  %v1900_v43 = vpop.eup %1899  ;;  %v1094_v9 = vsel %vm1030_vm9, %v998_v52, %v1062_v29  ;;  %v845_v32 = vsub.f32 0.0, %v429_v21 }
 0x199   :  { %v679_v8 = vmul.f32 %v2819_v28, %v647_v63  ;;  %1905 = vrcp.f32 %v490_v10  ;;  %v2861_v20 = vpop.eup %1901  ;;  %v1126_v54 = vadd.f32 1.0, %v1094_v9  ;;  %v969_v24 = vmul.f32 %v1900_v43, %v809_v61  ;;  %v3272_v61 = vld [vmem:[#allocation18_spill] sm:$0xff] }
 0x19a   :  { %v934_v62 = vmul.f32 1.442695, %v874_v30  ;;  %v493_v53 = vadd.f32 1.0, %v461_v0  ;;  %v556_v58 = vmul.f32 1.0614054, %v2861_v20  ;;  %1907 = vpow2.f32 %v938_v60  ;;  %v3273_v0 = vld [vmem:[#allocation19_spill] sm:$0xff] }
 0x19b   :  { %v711_v56 = vadd.f32 -0.28449672, %v679_v8  ;;  %v427_v16 = vand.u32 2147483647, %v2856_v7  ;;  %v1904_v44 = vpop.eup %1903  ;;  %v2866_v17 = vmul.f32 %v1128_v6, %v2713_v57  ;;  %v1001_v2 = vsub.f32 1.0, %v969_v24 }
 0x19c   :  { %1909 = vrcp.f32 %v493_v53  ;;  %v530_v51 = vmul.f32 1.0614054, %v3270_v41  ;;  %v588_v47 = vadd.f32 -1.4531521, %v556_v58  ;;  %v877_v52 = vmul.f32 %v845_v32, %v429_v21 }
 0x19d   :  { %v743_v39 = vmul.f32 %v2819_v28, %v711_v56  ;;  %v459_v46 = vmul.f32 0.3275911, %v427_v16  ;;  %v2871_v19 = vmul.f32 %v1126_v54, %v2747_v55  ;;  %v1065_v35 = vsub.f32 0.0, %v1001_v2 }
 0x19e   :  { %1911 = vpow2.f32 %v934_v62  ;;  %v531_v60 = vmul.f32 1.0614054, %v3271_v37  ;;  %v620_v57 = vmul.f32 %v2861_v20, %v588_v47  ;;  %v843_v63 = vsub.f32 0.0, %v427_v16 }
 0x19f   :  { %v775_v29 = vadd.f32 0.2548296, %v743_v39  ;;  %v491_v6 = vadd.f32 1.0, %v459_v46  ;;  %v1097_v10 = vsel %vm1033_vm10, %v1001_v2, %v1065_v35  ;;  %vm1031_vm11 = vcmp.ge.f32.partialorder %v2752_v18, 0.0 }
 0x1a0   :  { %v562_v30 = vadd.f32 -1.4531521, %v530_v51  ;;  %v563_v21 = vadd.f32 -1.4531521, %v531_v60  ;;  %v1201_v55 = vpack.c.bf16 %v3273_v0, %v3272_v61  ;;  %v1129_v43 = vadd.f32 1.0, %v1097_v10 }
 0x1a1   :  { %v807_v9 = vmul.f32 %v2819_v28, %v775_v29  ;;  %v652_v8 = vadd.f32 1.4214138, %v620_v57  ;;  %1913 = vrcp.f32 %v491_v6  ;;  %v2881_v32 = vmul.f32 1.442695, %v877_v52 }
 0x1a2   :  { %v594_v54 = vmul.f32 %v3270_v41, %v562_v30  ;;  %v595_v24 = vmul.f32 %v3271_v37, %v563_v21  ;;  %v1202_v1 = vpack.c.bf16 %v2613_v42, %v2542_v48  ;;  %v2890_v58 = vmul.f32 %v843_v63, %v427_v16 }
 0x1a3   :  { %v2887_v62 = vpop.eup %1905  ;;  %v967_v53 = vmul.f32 %v1904_v44, %v807_v9  ;;  %v684_v56 = vmul.f32 %v2861_v20, %v652_v8  ;;  %v1203_v28 = vpack.c.bf16 %v2587_v5, %v2527_v49  ;;  %v2895_v2 = vmul.f32 %v1129_v43, %v2768_v34 }
 0x1a4   :  { %v554_v51 = vmul.f32 1.0614054, %v2887_v62  ;;  %v626_v39 = vadd.f32 1.4214138, %v594_v54  ;;  %v627_v47 = vadd.f32 1.4214138, %v595_v24  ;;  %v2898_v52 = vpop.eup %1907  ;;  %v1204_v44 = vpack.c.bf16 %v2671_v45, %v2633_v12 }
 0x1a5   :  { %v999_v46 = vsub.f32 1.0, %v967_v53  ;;  %v716_v35 = vadd.f32 -0.28449672, %v684_v56  ;;  %v1205_v16 = vpack.c.bf16 %v2650_v26, %v2626_v25  ;;  %v1208_v24 = vpack.c.bf16 %v2852_v36, %v2815_v50 }
 0x1a6   :  { %v2904_v60 = vpop.eup %1909  ;;  %v586_v29 = vadd.f32 -1.4531521, %v554_v51  ;;  %v658_v34 = vmul.f32 %v3270_v41, %v626_v39  ;;  %v659_v57 = vmul.f32 %v3271_v37, %v627_v47  ;;  %1915 = vpow2.f32 %v2881_v32 }
 0x1a7   :  { %v1063_v63 = vsub.f32 0.0, %v999_v46  ;;  %v748_v10 = vmul.f32 %v2861_v20, %v716_v35  ;;  %v557_v30 = vmul.f32 1.0614054, %v2904_v60  ;;  %vm1036_vm14 = vcmp.ge.f32.partialorder %v2793_v23, 0.0 }
 0x1a8   :  { %v2914_v43 = vpop.eup %1911  ;;  %v618_v9 = vmul.f32 %v2887_v62, %v586_v29  ;;  %v690_v8 = vadd.f32 -0.28449672, %v658_v34  ;;  %v691_v54 = vadd.f32 -0.28449672, %v659_v57  ;;  %vm1037_vm15 = vcmp.ge.f32.partialorder %v2839_v13, 0.0 }
 0x1a9   :  { %v1095_v53 = vsel %vm1031_vm11, %v999_v46, %v1063_v63  ;;  %v780_v56 = vadd.f32 0.2548296, %v748_v10  ;;  %v589_v51 = vadd.f32 -1.4531521, %v557_v30  ;;  %vm1034_vm1 = vcmp.ge.f32.partialorder %v2834_v3, 0.0 }
 0x1aa   :  { %v1127_v47 = vadd.f32 1.0, %v1095_v53  ;;  %v650_v35 = vadd.f32 1.4214138, %v618_v9  ;;  %v722_v21 = vmul.f32 %v3270_v41, %v690_v8  ;;  %v723_v6 = vmul.f32 %v3271_v37, %v691_v54 }
 0x1ab   :  { %v2925_v29 = vpop.eup %1913  ;;  %v812_v34 = vmul.f32 %v2861_v20, %v780_v56  ;;  %v621_v57 = vmul.f32 %v2904_v60, %v589_v51  ;;  %v1920_v9 = vmov 0.0   ;;  %vm1035_vm2 = vcmp.ge.f32.partialorder %v2856_v7, 0.0  ;;  %v3039_v7 = vld [vmem:[%s3233_s4] ss:$0 sm:$0xff] }
 0x1ac   :  { %v2932_v46 = vmul.f32 %v1127_v47, %v2801_v33  ;;  %v682_v63 = vmul.f32 %v2887_v62, %v650_v35  ;;  %v555_v10 = vmul.f32 1.0614054, %v2925_v29  ;;  %v754_v30 = vadd.f32 0.2548296, %v722_v21  ;;  %72 = vst.msk [vmem:[#allocation2 + $0x10] sm:$0xff] %vm69_vm0, %v1920_v9  ;;  %70 = vst.msk [vmem:[#allocation2] sm:$0xff] %vm69_vm0, %v1920_v9 }
 0x1ad   :  { %71 = vst.msk [vmem:[#allocation2 + $0x8] sm:$0xff] %vm69_vm0, %v1920_v9  ;;  %73 = vst.msk [vmem:[#allocation2 + $0x18] sm:$0xff] %vm69_vm0, %v1920_v9  ;;  %v653_v33 = vadd.f32 1.4214138, %v621_v57  ;;  %v755_v20 = vadd.f32 0.2548296, %v723_v6  ;;  %v972_v56 = vmul.f32 %v2898_v52, %v812_v34  ;;  %v3280_v42 = vpack.c.bf16 %v2786_v31, %v2708_v11 }
 0x1ae   :  { %74 = vst.msk [vmem:[#allocation2 + $0x20] sm:$0xff] %vm69_vm0, %v1920_v9  ;;  %75 = vst.msk [vmem:[#allocation2 + $0x28] sm:$0xff] %vm69_vm0, %v1920_v9  ;;  %v714_v21 = vadd.f32 -0.28449672, %v682_v63  ;;  %v587_v8 = vadd.f32 -1.4531521, %v555_v10  ;;  %v786_v54 = vmul.f32 %v3270_v41, %v754_v30  ;;  %v3282_v49 = vpack.c.bf16 %v2847_v22, %v2804_v59 }
 0x1af   :  { %76 = vst.msk [vmem:[#allocation2 + $0x30] sm:$0xff] %vm69_vm0, %v1920_v9  ;;  %77 = vst.msk [vmem:[#allocation2 + $0x38] sm:$0xff] %vm69_vm0, %v1920_v9  ;;  %v685_v51 = vmul.f32 %v2904_v60, %v653_v33  ;;  %v936_v47 = vmul.f32 1.442695, %v2890_v58  ;;  %v787_v35 = vmul.f32 %v3271_v37, %v755_v20  ;;  %v3274_v6 = vld [vmem:[#allocation13_spill] sm:$0xff]  ;;  %v1004_v39 = vsub.f32 1.0, %v972_v56 }
 0x1b0   :  { %78 = vst.msk [vmem:[#allocation2 + $0x40] sm:$0xff] %vm69_vm0, %v1920_v9  ;;  %79 = vst.msk [vmem:[#allocation2 + $0x48] sm:$0xff] %vm69_vm0, %v1920_v9  ;;  %v746_v57 = vmul.f32 %v2887_v62, %v714_v21  ;;  %v619_v32 = vmul.f32 %v2925_v29, %v587_v8  ;;  %v946_v63 = vmul.f32 %v3274_v6, %v786_v54  ;;  %v3276_v20 = vld [vmem:[#allocation3_spill] sm:$0xff]  ;;  %v3277_v8 = vld [vmem:[#allocation4_spill] sm:$0xff]  ;;  %v1916_v6 = vpop.eup %1915  ;;  %v362_v61 = vmul.f32 0.5, %v2809_v15 }
 0x1b1   :  { %80 = vst.msk [vmem:[#allocation2 + $0x50] sm:$0xff] %vm69_vm0, %v1920_v9  ;;  %81 = vst.msk [vmem:[#allocation2 + $0x58] sm:$0xff] %vm69_vm0, %v1920_v9  ;;  %v717_v10 = vadd.f32 -0.28449672, %v685_v51  ;;  %1917 = vpow2.f32 %v936_v47  ;;  %v338_v21 = vmul.f32 0.5, %v3276_v20  ;;  %vm1010_vm12 = vcmp.ge.f32.partialorder %v3277_v8, 0.0 }
 0x1b2   :  { %82 = vst.msk [vmem:[#allocation2 + $0x60] sm:$0xff] %vm69_vm0, %v1920_v9  ;;  %83 = vst.msk [vmem:[#allocation2 + $0x68] sm:$0xff] %vm69_vm0, %v1920_v9  ;;  %v778_v30 = vadd.f32 0.2548296, %v746_v57  ;;  %v651_v18 = vadd.f32 1.4214138, %v619_v32  ;;  %v3281_v15 = vpack.c.bf16 %v2763_v14, %v2688_v4  ;;  %v3283_v5 = vpack.c.bf16 %v2932_v46, %v2871_v19 }
 0x1b3   :  { %84 = vst.msk [vmem:[#allocation2 + $0x70] sm:$0xff] %vm69_vm0, %v1920_v9  ;;  %85 = vst.msk [vmem:[#allocation2 + $0x78] sm:$0xff] %vm69_vm0, %v1920_v9  ;;  %v978_v53 = vsub.f32 1.0, %v946_v63  ;;  %v749_v52 = vmul.f32 %v2904_v60, %v717_v10  ;;  %v1068_v47 = vsub.f32 0.0, %v1004_v39  ;;  %v363_v0 = vmul.f32 0.5, %v2843_v27  ;;  %v1168_v12 = vld [vmem:[#allocation2 + $0x10] sm:$0xff] }
 0x1b4   :  { %86 = vst.msk [vmem:[#allocation2 + $0x80] sm:$0xff] %vm69_vm0, %v1920_v9  ;;  %87 = vst.msk [vmem:[#allocation2 + $0x88] sm:$0xff] %vm69_vm0, %v1920_v9  ;;  %v810_v58 = vmul.f32 %v2887_v62, %v778_v30  ;;  %v683_v37 = vmul.f32 %v2925_v29, %v651_v18  ;;  %v3279_v18 = vld [vmem:[#allocation5_spill] sm:$0xff]  ;;  %v3284_v25 = vpack.c.bf16 %v2895_v2, %v2866_v17  ;;  %v1166_v26 = vld [vmem:[#allocation2] sm:$0xff] }
 0x1b5   :  { %88 = vst.msk [vmem:[#allocation2 + $0x90] sm:$0xff] %vm69_vm0, %v1920_v9  ;;  %89 = vst.msk [vmem:[#allocation2 + $0x98] sm:$0xff] %vm69_vm0, %v1920_v9  ;;  %v1042_v33 = vsub.f32 0.0, %v978_v53  ;;  %v781_v54 = vadd.f32 0.2548296, %v749_v52  ;;  %v1169_v4 = vld [vmem:[#allocation2 + $0x18] sm:$0xff] }
 0x1b6   :  { %90 = vst.msk [vmem:[#allocation2 + $0xa0] sm:$0xff] %vm69_vm0, %v1920_v9  ;;  %91 = vst.msk [vmem:[#allocation2 + $0xa8] sm:$0xff] %vm69_vm0, %v1920_v9  ;;  %v970_v57 = vmul.f32 %v2914_v43, %v810_v58  ;;  %v715_v56 = vadd.f32 -0.28449672, %v683_v37  ;;  %v1100_v58 = vsel %vm1036_vm14, %v1004_v39, %v1068_v47  ;;  %v1167_v31 = vld [vmem:[#allocation2 + $0x8] sm:$0xff]  ;;  %v1172_v46 = vld [vmem:[#allocation2 + $0x30] sm:$0xff] }
 0x1b7   :  { %92 = vst.msk [vmem:[#allocation2 + $0xb0] sm:$0xff] %vm69_vm0, %v1920_v9  ;;  %93 = vst.msk [vmem:[#allocation2 + $0xb8] sm:$0xff] %vm69_vm0, %v1920_v9  ;;  %v1074_v32 = vsel %vm1010_vm12, %v978_v53, %v1042_v33  ;;  %v813_v63 = vmul.f32 %v2904_v60, %v781_v54 }
 0x1b8   :  { %94 = vst.msk [vmem:[#allocation2 + $0xc0] sm:$0xff] %vm69_vm0, %v1920_v9  ;;  %95 = vst.msk [vmem:[#allocation2 + $0xc8] sm:$0xff] %vm69_vm0, %v1920_v9  ;;  %v1106_v10 = vadd.f32 1.0, %v1074_v32  ;;  %v747_v30 = vmul.f32 %v2925_v29, %v715_v56  ;;  %v364_v56 = vmul.f32 0.5, %v2777_v38 }
 0x1b9   :  { %96 = vst.msk [vmem:[#allocation2 + $0xd0] sm:$0xff] %vm69_vm0, %v1920_v9  ;;  %97 = vst.msk [vmem:[#allocation2 + $0xd8] sm:$0xff] %vm69_vm0, %v1920_v9  ;;  %v973_v52 = vmul.f32 %v1916_v6, %v813_v63 }
 0x1ba   :  { %98 = vst.msk [vmem:[#allocation2 + $0xe0] sm:$0xff] %vm69_vm0, %v1920_v9  ;;  %99 = vst.msk [vmem:[#allocation2 + $0xe8] sm:$0xff] %vm69_vm0, %v1920_v9  ;;  %v779_v8 = vadd.f32 0.2548296, %v747_v30 }
 0x1bb   :  { %100 = vst.msk [vmem:[#allocation2 + $0xf0] sm:$0xff] %vm69_vm0, %v1920_v9  ;;  %101 = vst.msk [vmem:[#allocation2 + $0xf8] sm:$0xff] %vm69_vm0, %v1920_v9  ;;  %v3275_v9 = vld [vmem:[#allocation17_spill] sm:$0xff]  ;;  %v1005_v53 = vsub.f32 1.0, %v973_v52 }
 0x1bc   :  { %v947_v41 = vmul.f32 %v3275_v9, %v787_v35  ;;  %v3278_v35 = vld [vmem:[#allocation6_spill] sm:$0xff]  ;;  %v339_v9 = vmul.f32 0.5, %v3279_v18  ;;  %v811_v33 = vmul.f32 %v2925_v29, %v779_v8  ;;  %v365_v29 = vmul.f32 0.5, %v2827_v40 }
 0x1bd   :  { %vm1011_vm13 = vcmp.ge.f32.partialorder %v3278_v35, 0.0  ;;  %v1138_v35 = vmul.f32 %v1106_v10, %v338_v21  ;;  %v1069_v54 = vsub.f32 0.0, %v1005_v53  ;;  %v1170_v10 = vld [vmem:[#allocation2 + $0x20] sm:$0xff] }
 0x1be   :  { %v979_v34 = vsub.f32 1.0, %v947_v41  ;;  %v1002_v41 = vsub.f32 1.0, %v970_v57 }
 0x1bf   :  { %v1101_v23 = vsel %vm1037_vm15, %v1005_v53, %v1069_v54  ;;  %v1176_v53 = vld [vmem:[#allocation2 + $0x50] sm:$0xff] }
 0x1c0   :  { %v1043_v51 = vsub.f32 0.0, %v979_v34  ;;  %v1066_v37 = vsub.f32 0.0, %v1002_v41  ;;  %v1133_v21 = vadd.f32 1.0, %v1101_v23 }
 0x1c2   :  { %v1075_v62 = vsel %vm1011_vm13, %v979_v34, %v1043_v51  ;;  %v1918_v34 = vpop.eup %1917  ;;  %v1132_v51 = vadd.f32 1.0, %v1100_v58  ;;  %v1098_v39 = vsel %vm1034_vm1, %v1002_v41, %v1066_v37  ;;  %v1165_v6 = vmul.f32 %v1133_v21, %v365_v29  ;;  %v1174_v37 = vld [vmem:[#allocation2 + $0x40] sm:$0xff] }
 0x1c3   :  { %v1107_v20 = vadd.f32 1.0, %v1075_v62  ;;  %v971_v57 = vmul.f32 %v1918_v34, %v811_v33  ;;  %v1130_v38 = vadd.f32 1.0, %v1098_v39 }
 0x1c4   :  { %v1164_v13 = vmul.f32 %v1132_v51, %v364_v56  ;;  %v1175_v51 = vld [vmem:[#allocation2 + $0x48] sm:$0xff] }
 0x1c5   :  { %v1139_v43 = vmul.f32 %v1107_v20, %v339_v9  ;;  %v1003_v32 = vsub.f32 1.0, %v971_v57  ;;  %v1162_v40 = vmul.f32 %v1130_v38, %v362_v61  ;;  %v1173_v9 = vld [vmem:[#allocation2 + $0x38] sm:$0xff]  ;;  %v1171_v20 = vld [vmem:[#allocation2 + $0x28] sm:$0xff]  ;;  %v1180_v61 = vld [vmem:[#allocation2 + $0x70] sm:$0xff] }
 0x1c6   :  { %v1213_v63 = vpack.c.bf16 %v1165_v6, %v1164_v13 }
 0x1c7   :  { %v1200_v60 = vpack.c.bf16 %v1139_v43, %v1138_v35  ;;  %v1067_v47 = vsub.f32 0.0, %v1003_v32 }
 0x1c9   :  { %1736 = vmatprep.mubr.bf16.mxu1 %v1200_v60  ;;  %v1099_v3 = vsel %vm1035_vm2, %v1003_v32, %v1067_v47  ;;  %v1177_v60 = vld [vmem:[#allocation2 + $0x58] sm:$0xff] }
 0x1ca   :  { %1737 = vmatmul.mubr.bf16.vlgmr.msra.gmra.mrb[0].mxu1 %v1201_v55  ;;  %v1131_v55 = vadd.f32 1.0, %v1099_v3 }
 0x1cb   :  { %1740 = vmatprep.mubr.bf16.mxu1 %v1202_v1 }
 0x1cc   :  { %v1163_v62 = vmul.f32 %v1131_v55, %v363_v0  ;;  %v1178_v0 = vld [vmem:[#allocation2 + $0x60] sm:$0xff] }
 0x1ce   :  { %v1212_v48 = vpack.c.bf16 %v1163_v62, %v1162_v40  ;;  %v1181_v40 = vld [vmem:[#allocation2 + $0x78] sm:$0xff] }
 0x1d2   :  { %1741 = vmatmul.mubr.bf16.gmra.mrb[4].mxu1 %v1203_v28 }
 0x1d3   :  { %1744 = vmatprep.mubr.bf16.mxu1 %v1204_v44 }
 0x1da   :  { %1745 = vmatmul.mubr.bf16.gmra.mrb[8].mxu1 %v1205_v16 }
 0x1db   :  { %1748 = vmatprep.mubr.bf16.mxu1 %v3280_v42  ;;  %v1179_v42 = vld [vmem:[#allocation2 + $0x68] sm:$0xff] }
 0x1e2   :  { %1749 = vmatmul.mubr.bf16.gmra.mrb[12].mxu1 %v3281_v15 }
 0x1e3   :  { %1752 = vmatprep.mubr.bf16.mxu1 %v1208_v24 }
 0x1ea   :  { %1753 = vmatmul.mubr.bf16.gmra.mrb[16].mxu1 %v3282_v49 }
 0x1eb   :  { %1756 = vmatprep.mubr.bf16.mxu1 %v3283_v5 }
 0x1f2   :  { %1757 = vmatmul.mubr.bf16.gmra.mrb[20].mxu1 %v3284_v25 }
 0x1f3   :  { %1760 = vmatprep.mubr.bf16.mxu1 %v1212_v48 }
 0x1fa   :  { %1761 = vmatmul.mubr.bf16.gmra.mrb[24].mxu1 %v1213_v63 }
 0x262   :  { %v1734_v45 = vpop.f32.mrb[32].mxu0 }
 0x263   :  { %v1441_v11 = vadd.f32 %v1734_v45, %v1168_v12  ;;  %v1312_v14 = vpop.f32.mrb[33].mxu0 }
 0x264   :  { %v1439_v50 = vadd.f32 %v1312_v14, %v1166_v26  ;;  %v1735_v59 = vpop.f32.mrb[34].mxu0 }
 0x265   :  { %1473 = vst.msk [vmem:[#allocation2 + $0x10] sm:$0xff] %vm69_vm0, %v1441_v11  ;;  %v1442_v27 = vadd.f32 %v1735_v59, %v1169_v4  ;;  %v1315_v22 = vpop.f32.mrb[35].mxu0 }
 0x266   :  { %1471 = vst.msk [vmem:[#allocation2] sm:$0xff] %vm69_vm0, %v1439_v50  ;;  %v1440_v36 = vadd.f32 %v1315_v22, %v1167_v31  ;;  %v1182_v22 = vld [vmem:[#allocation2 + $0x80] sm:$0xff] }
 0x267   :  { %1474 = vst.msk [vmem:[#allocation2 + $0x18] sm:$0xff] %vm69_vm0, %v1442_v27  ;;  %v1184_v27 = vld [vmem:[#allocation2 + $0x90] sm:$0xff] }
 0x268   :  { %1472 = vst.msk [vmem:[#allocation2 + $0x8] sm:$0xff] %vm69_vm0, %v1440_v36 }
 0x26c   :  { %v1505_v17 = vld [vmem:[#allocation2 + $0x10] sm:$0xff] }
 0x26d   :  { %v1544_v19 = vadd.f32 %v3039_v7, %v1505_v17  ;;  %v1503_v1 = vld [vmem:[#allocation2] sm:$0xff]  ;;  %v1185_v17 = vld [vmem:[#allocation2 + $0x98] sm:$0xff] }
 0x26e   :  { %v1542_v28 = vadd.f32 %v3039_v7, %v1503_v1  ;;  %v1506_v2 = vld [vmem:[#allocation2 + $0x18] sm:$0xff] }
 0x26f   :  { %1576 = vst.msk [vmem:[%s3234_s5 + $0x10] sm:$0xff] %vm69_vm0, %v1544_v19  ;;  %v1545_v44 = vadd.f32 %v3039_v7, %v1506_v2  ;;  %v1504_v16 = vld [vmem:[#allocation2 + $0x8] sm:$0xff] }
 0x270   :  { %1574 = vst.msk [vmem:[%s3234_s5] sm:$0xff] %vm69_vm0, %v1542_v28  ;;  %v1543_v24 = vadd.f32 %v3039_v7, %v1504_v16  ;;  %v1183_v28 = vld [vmem:[#allocation2 + $0x88] sm:$0xff] }
 0x271   :  { %1577 = vst.msk [vmem:[%s3234_s5 + $0x18] sm:$0xff] %vm69_vm0, %v1545_v44 }
 0x272   :  { %1575 = vst.msk [vmem:[%s3234_s5 + $0x8] sm:$0xff] %vm69_vm0, %v1543_v24 }
 0x29d   :  { %v1738_v18 = vpop.f32.mrb[0].mxu1 }
 0x29e   :  { %v1445_v41 = vadd.f32 %v1738_v18, %v1172_v46  ;;  %v1328_v30 = vpop.f32.mrb[1].mxu1 }
 0x29f   :  { %v1443_v52 = vadd.f32 %v1328_v30, %v1170_v10  ;;  %v1739_v8 = vpop.f32.mrb[2].mxu1 }
 0x2a0   :  { %1477 = vst.msk [vmem:[#allocation2 + $0x30] sm:$0xff] %vm69_vm0, %v1445_v41  ;;  %v1446_v35 = vadd.f32 %v1739_v8, %v1173_v9  ;;  %v1331_v43 = vpop.f32.mrb[3].mxu1 }
 0x2a1   :  { %1475 = vst.msk [vmem:[#allocation2 + $0x20] sm:$0xff] %vm69_vm0, %v1443_v52  ;;  %v1444_v58 = vadd.f32 %v1331_v43, %v1171_v20  ;;  %v1186_v43 = vld [vmem:[#allocation2 + $0xa0] sm:$0xff] }
 0x2a2   :  { %1478 = vst.msk [vmem:[#allocation2 + $0x38] sm:$0xff] %vm69_vm0, %v1446_v35  ;;  %v1188_v35 = vld [vmem:[#allocation2 + $0xb0] sm:$0xff] }
 0x2a3   :  { %1476 = vst.msk [vmem:[#allocation2 + $0x28] sm:$0xff] %vm69_vm0, %v1444_v58 }
 0x2a5   :  { %v1742_v33 = vpop.f32.mrb[4].mxu1 }
 0x2a6   :  { %v1449_v34 = vadd.f32 %v1742_v33, %v1176_v53  ;;  %v1344_v54 = vpop.f32.mrb[5].mxu1  ;;  %v1189_v53 = vld [vmem:[#allocation2 + $0xb8] sm:$0xff] }
 0x2a7   :  { %v1509_v57 = vld [vmem:[#allocation2 + $0x30] sm:$0xff]  ;;  %v1447_v56 = vadd.f32 %v1344_v54, %v1174_v37  ;;  %v1743_v23 = vpop.f32.mrb[6].mxu1 }
 0x2a8   :  { %v1548_v39 = vadd.f32 %v3039_v7, %v1509_v57  ;;  %v1507_v29 = vld [vmem:[#allocation2 + $0x20] sm:$0xff]  ;;  %1481 = vst.msk [vmem:[#allocation2 + $0x50] sm:$0xff] %vm69_vm0, %v1449_v34  ;;  %v1450_v21 = vadd.f32 %v1743_v23, %v1177_v60  ;;  %v1347_v32 = vpop.f32.mrb[7].mxu1  ;;  %v1187_v60 = vld [vmem:[#allocation2 + $0xa8] sm:$0xff] }
 0x2a9   :  { %v1546_v13 = vadd.f32 %v3039_v7, %v1507_v29  ;;  %v1510_v6 = vld [vmem:[#allocation2 + $0x38] sm:$0xff]  ;;  %1479 = vst.msk [vmem:[#allocation2 + $0x40] sm:$0xff] %vm69_vm0, %v1447_v56  ;;  %v1448_v47 = vadd.f32 %v1347_v32, %v1175_v51 }
 0x2aa   :  { %1580 = vst.msk [vmem:[%s3234_s5 + $0x30] sm:$0xff] %vm69_vm0, %v1548_v39  ;;  %v1549_v38 = vadd.f32 %v3039_v7, %v1510_v6  ;;  %v1508_v3 = vld [vmem:[#allocation2 + $0x28] sm:$0xff]  ;;  %1482 = vst.msk [vmem:[#allocation2 + $0x58] sm:$0xff] %vm69_vm0, %v1450_v21 }
 0x2ab   :  { %1578 = vst.msk [vmem:[%s3234_s5 + $0x20] sm:$0xff] %vm69_vm0, %v1546_v13  ;;  %v1547_v63 = vadd.f32 %v3039_v7, %v1508_v3  ;;  %1480 = vst.msk [vmem:[#allocation2 + $0x48] sm:$0xff] %vm69_vm0, %v1448_v47  ;;  %v1190_v3 = vld [vmem:[#allocation2 + $0xc0] sm:$0xff] }
 0x2ac   :  { %1581 = vst.msk [vmem:[%s3234_s5 + $0x38] sm:$0xff] %vm69_vm0, %v1549_v38  ;;  %v1192_v38 = vld [vmem:[#allocation2 + $0xd0] sm:$0xff] }
 0x2ad   :  { %1579 = vst.msk [vmem:[%s3234_s5 + $0x28] sm:$0xff] %vm69_vm0, %v1547_v63  ;;  %v1746_v55 = vpop.f32.mrb[8].mxu1 }
 0x2ae   :  { %v1453_v62 = vadd.f32 %v1746_v55, %v1180_v61  ;;  %v1360_v48 = vpop.f32.mrb[9].mxu1  ;;  %v1193_v61 = vld [vmem:[#allocation2 + $0xd8] sm:$0xff] }
 0x2af   :  { %v1513_v15 = vld [vmem:[#allocation2 + $0x50] sm:$0xff]  ;;  %v1451_v49 = vadd.f32 %v1360_v48, %v1178_v0  ;;  %v1747_v5 = vpop.f32.mrb[10].mxu1 }
 0x2b0   :  { %v1552_v25 = vadd.f32 %v3039_v7, %v1513_v15  ;;  %v1511_v12 = vld [vmem:[#allocation2 + $0x40] sm:$0xff]  ;;  %1485 = vst.msk [vmem:[#allocation2 + $0x70] sm:$0xff] %vm69_vm0, %v1453_v62  ;;  %v1454_v26 = vadd.f32 %v1747_v5, %v1181_v40  ;;  %v1363_v45 = vpop.f32.mrb[11].mxu1  ;;  %v1191_v40 = vld [vmem:[#allocation2 + $0xc8] sm:$0xff] }
 0x2b1   :  { %v1550_v4 = vadd.f32 %v3039_v7, %v1511_v12  ;;  %v1514_v11 = vld [vmem:[#allocation2 + $0x58] sm:$0xff]  ;;  %1483 = vst.msk [vmem:[#allocation2 + $0x60] sm:$0xff] %vm69_vm0, %v1451_v49  ;;  %v1452_v14 = vadd.f32 %v1363_v45, %v1179_v42 }
 0x2b2   :  { %1584 = vst.msk [vmem:[%s3234_s5 + $0x50] sm:$0xff] %vm69_vm0, %v1552_v25  ;;  %v1553_v31 = vadd.f32 %v3039_v7, %v1514_v11  ;;  %v1512_v50 = vld [vmem:[#allocation2 + $0x48] sm:$0xff]  ;;  %1486 = vst.msk [vmem:[#allocation2 + $0x78] sm:$0xff] %vm69_vm0, %v1454_v26 }
 0x2b3   :  { %1582 = vst.msk [vmem:[%s3234_s5 + $0x40] sm:$0xff] %vm69_vm0, %v1550_v4  ;;  %v1551_v59 = vadd.f32 %v3039_v7, %v1512_v50  ;;  %1484 = vst.msk [vmem:[#allocation2 + $0x68] sm:$0xff] %vm69_vm0, %v1452_v14  ;;  %v1194_v50 = vld [vmem:[#allocation2 + $0xe0] sm:$0xff] }
 0x2b4   :  { %1585 = vst.msk [vmem:[%s3234_s5 + $0x58] sm:$0xff] %vm69_vm0, %v1553_v31  ;;  %v1196_v31 = vld [vmem:[#allocation2 + $0xf0] sm:$0xff] }
 0x2b5   :  { %1583 = vst.msk [vmem:[%s3234_s5 + $0x48] sm:$0xff] %vm69_vm0, %v1551_v59  ;;  %v1750_v36 = vpop.f32.mrb[12].mxu1 }
 0x2b6   :  { %v1457_v19 = vadd.f32 %v1750_v36, %v1184_v27  ;;  %v1376_v1 = vpop.f32.mrb[13].mxu1  ;;  %v1197_v27 = vld [vmem:[#allocation2 + $0xf8] sm:$0xff] }
 0x2b7   :  { %v1517_v2 = vld [vmem:[#allocation2 + $0x70] sm:$0xff]  ;;  %v1455_v44 = vadd.f32 %v1376_v1, %v1182_v22  ;;  %v1751_v16 = vpop.f32.mrb[14].mxu1 }
 0x2b8   :  { %v1556_v24 = vadd.f32 %v3039_v7, %v1517_v2  ;;  %v1515_v46 = vld [vmem:[#allocation2 + $0x60] sm:$0xff]  ;;  %1489 = vst.msk [vmem:[#allocation2 + $0x90] sm:$0xff] %vm69_vm0, %v1457_v19  ;;  %v1458_v10 = vadd.f32 %v1751_v16, %v1185_v17  ;;  %v1379_v18 = vpop.f32.mrb[15].mxu1  ;;  %v1195_v17 = vld [vmem:[#allocation2 + $0xe8] sm:$0xff] }
 0x2b9   :  { %v1554_v9 = vadd.f32 %v3039_v7, %v1515_v46  ;;  %v1518_v41 = vld [vmem:[#allocation2 + $0x78] sm:$0xff]  ;;  %1487 = vst.msk [vmem:[#allocation2 + $0x80] sm:$0xff] %vm69_vm0, %v1455_v44  ;;  %v1456_v30 = vadd.f32 %v1379_v18, %v1183_v28 }
 0x2ba   :  { %1588 = vst.msk [vmem:[%s3234_s5 + $0x70] sm:$0xff] %vm69_vm0, %v1556_v24  ;;  %v1557_v20 = vadd.f32 %v3039_v7, %v1518_v41  ;;  %v1516_v52 = vld [vmem:[#allocation2 + $0x68] sm:$0xff]  ;;  %1490 = vst.msk [vmem:[#allocation2 + $0x98] sm:$0xff] %vm69_vm0, %v1458_v10 }
 0x2bb   :  { %1586 = vst.msk [vmem:[%s3234_s5 + $0x60] sm:$0xff] %vm69_vm0, %v1554_v9  ;;  %v1555_v8 = vadd.f32 %v3039_v7, %v1516_v52  ;;  %1488 = vst.msk [vmem:[#allocation2 + $0x88] sm:$0xff] %vm69_vm0, %v1456_v30 }
 0x2bc   :  { %1589 = vst.msk [vmem:[%s3234_s5 + $0x78] sm:$0xff] %vm69_vm0, %v1557_v20 }
 0x2bd   :  { %1587 = vst.msk [vmem:[%s3234_s5 + $0x68] sm:$0xff] %vm69_vm0, %v1555_v8  ;;  %v1754_v58 = vpop.f32.mrb[16].mxu1 }
 0x2be   :  { %v1461_v37 = vadd.f32 %v1754_v58, %v1188_v35  ;;  %v1392_v33 = vpop.f32.mrb[17].mxu1 }
 0x2bf   :  { %v1521_v34 = vld [vmem:[#allocation2 + $0x90] sm:$0xff]  ;;  %v1459_v54 = vadd.f32 %v1392_v33, %v1186_v43  ;;  %v1755_v51 = vpop.f32.mrb[18].mxu1 }
 0x2c0   :  { %v1560_v57 = vadd.f32 %v3039_v7, %v1521_v34  ;;  %v1519_v56 = vld [vmem:[#allocation2 + $0x80] sm:$0xff]  ;;  %1493 = vst.msk [vmem:[#allocation2 + $0xb0] sm:$0xff] %vm69_vm0, %v1461_v37  ;;  %v1462_v23 = vadd.f32 %v1755_v51, %v1189_v53  ;;  %v1395_v39 = vpop.f32.mrb[19].mxu1 }
 0x2c1   :  { %v1558_v29 = vadd.f32 %v3039_v7, %v1519_v56  ;;  %v1522_v21 = vld [vmem:[#allocation2 + $0x98] sm:$0xff]  ;;  %1491 = vst.msk [vmem:[#allocation2 + $0xa0] sm:$0xff] %vm69_vm0, %v1459_v54  ;;  %v1460_v32 = vadd.f32 %v1395_v39, %v1187_v60 }
 0x2c2   :  { %1592 = vst.msk [vmem:[%s3234_s5 + $0x90] sm:$0xff] %vm69_vm0, %v1560_v57  ;;  %v1561_v13 = vadd.f32 %v3039_v7, %v1522_v21  ;;  %v1520_v6 = vld [vmem:[#allocation2 + $0x88] sm:$0xff]  ;;  %1494 = vst.msk [vmem:[#allocation2 + $0xb8] sm:$0xff] %vm69_vm0, %v1462_v23 }
 0x2c3   :  { %1590 = vst.msk [vmem:[%s3234_s5 + $0x80] sm:$0xff] %vm69_vm0, %v1558_v29  ;;  %v1559_v47 = vadd.f32 %v3039_v7, %v1520_v6  ;;  %1492 = vst.msk [vmem:[#allocation2 + $0xa8] sm:$0xff] %vm69_vm0, %v1460_v32 }
 0x2c4   :  { %1593 = vst.msk [vmem:[%s3234_s5 + $0x98] sm:$0xff] %vm69_vm0, %v1561_v13 }
 0x2c5   :  { %1591 = vst.msk [vmem:[%s3234_s5 + $0x88] sm:$0xff] %vm69_vm0, %v1559_v47  ;;  %v1758_v63 = vpop.f32.mrb[20].mxu1 }
 0x2c6   :  { %v1465_v0 = vadd.f32 %v1758_v63, %v1192_v38  ;;  %v1408_v55 = vpop.f32.mrb[21].mxu1 }
 0x2c7   :  { %v1525_v62 = vld [vmem:[#allocation2 + $0xb0] sm:$0xff]  ;;  %v1463_v48 = vadd.f32 %v1408_v55, %v1190_v3  ;;  %v1759_v42 = vpop.f32.mrb[22].mxu1 }
 0x2c8   :  { %v1564_v15 = vadd.f32 %v3039_v7, %v1525_v62  ;;  %v1523_v49 = vld [vmem:[#allocation2 + $0xa0] sm:$0xff]  ;;  %1497 = vst.msk [vmem:[#allocation2 + $0xd0] sm:$0xff] %vm69_vm0, %v1465_v0  ;;  %v1466_v5 = vadd.f32 %v1759_v42, %v1193_v61  ;;  %v1411_v25 = vpop.f32.mrb[23].mxu1 }
 0x2c9   :  { %v1562_v12 = vadd.f32 %v3039_v7, %v1523_v49  ;;  %v1526_v26 = vld [vmem:[#allocation2 + $0xb8] sm:$0xff]  ;;  %1495 = vst.msk [vmem:[#allocation2 + $0xc0] sm:$0xff] %vm69_vm0, %v1463_v48  ;;  %v1464_v45 = vadd.f32 %v1411_v25, %v1191_v40 }
 0x2ca   :  { %1596 = vst.msk [vmem:[%s3234_s5 + $0xb0] sm:$0xff] %vm69_vm0, %v1564_v15  ;;  %v1565_v4 = vadd.f32 %v3039_v7, %v1526_v26  ;;  %v1524_v11 = vld [vmem:[#allocation2 + $0xa8] sm:$0xff]  ;;  %1498 = vst.msk [vmem:[#allocation2 + $0xd8] sm:$0xff] %vm69_vm0, %v1466_v5 }
 0x2cb   :  { %1594 = vst.msk [vmem:[%s3234_s5 + $0xa0] sm:$0xff] %vm69_vm0, %v1562_v12  ;;  %v1563_v14 = vadd.f32 %v3039_v7, %v1524_v11  ;;  %1496 = vst.msk [vmem:[#allocation2 + $0xc8] sm:$0xff] %vm69_vm0, %v1464_v45 }
 0x2cc   :  { %1597 = vst.msk [vmem:[%s3234_s5 + $0xb8] sm:$0xff] %vm69_vm0, %v1565_v4 }
 0x2cd   :  { %1595 = vst.msk [vmem:[%s3234_s5 + $0xa8] sm:$0xff] %vm69_vm0, %v1563_v14  ;;  %v1762_v59 = vpop.f32.mrb[24].mxu1 }
 0x2ce   :  { %v1469_v22 = vadd.f32 %v1762_v59, %v1196_v31  ;;  %v1424_v36 = vpop.f32.mrb[25].mxu1 }
 0x2cf   :  { %v1529_v19 = vld [vmem:[#allocation2 + $0xd0] sm:$0xff]  ;;  %v1467_v1 = vadd.f32 %v1424_v36, %v1194_v50  ;;  %v1763_v28 = vpop.f32.mrb[26].mxu1 }
 0x2d0   :  { %v1568_v2 = vadd.f32 %v3039_v7, %v1529_v19  ;;  %v1527_v44 = vld [vmem:[#allocation2 + $0xc0] sm:$0xff]  ;;  %1501 = vst.msk [vmem:[#allocation2 + $0xf0] sm:$0xff] %vm69_vm0, %v1469_v22  ;;  %v1470_v16 = vadd.f32 %v1763_v28, %v1197_v27  ;;  %v1427_v24 = vpop.f32.mrb[27].mxu1 }
 0x2d1   :  { %v1566_v46 = vadd.f32 %v3039_v7, %v1527_v44  ;;  %v1530_v10 = vld [vmem:[#allocation2 + $0xd8] sm:$0xff]  ;;  %1499 = vst.msk [vmem:[#allocation2 + $0xe0] sm:$0xff] %vm69_vm0, %v1467_v1  ;;  %v1468_v18 = vadd.f32 %v1427_v24, %v1195_v17 }
 0x2d2   :  { %1600 = vst.msk [vmem:[%s3234_s5 + $0xd0] sm:$0xff] %vm69_vm0, %v1568_v2  ;;  %v1569_v9 = vadd.f32 %v3039_v7, %v1530_v10  ;;  %v1528_v41 = vld [vmem:[#allocation2 + $0xc8] sm:$0xff]  ;;  %1502 = vst.msk [vmem:[#allocation2 + $0xf8] sm:$0xff] %vm69_vm0, %v1470_v16 }
 0x2d3   :  { %1598 = vst.msk [vmem:[%s3234_s5 + $0xc0] sm:$0xff] %vm69_vm0, %v1566_v46  ;;  %v1567_v30 = vadd.f32 %v3039_v7, %v1528_v41  ;;  %1500 = vst.msk [vmem:[#allocation2 + $0xe8] sm:$0xff] %vm69_vm0, %v1468_v18 }
 0x2d4   :  { %1601 = vst.msk [vmem:[%s3234_s5 + $0xd8] sm:$0xff] %vm69_vm0, %v1569_v9 }
 0x2d5   :  { %1599 = vst.msk [vmem:[%s3234_s5 + $0xc8] sm:$0xff] %vm69_vm0, %v1567_v30 }
 0x2d7   :  { %v1533_v20 = vld [vmem:[#allocation2 + $0xf0] sm:$0xff] }
 0x2d8   :  { %v1572_v52 = vadd.f32 %v3039_v7, %v1533_v20  ;;  %v1531_v8 = vld [vmem:[#allocation2 + $0xe0] sm:$0xff] }
 0x2d9   :  { %v1570_v35 = vadd.f32 %v3039_v7, %v1531_v8  ;;  %v1534_v43 = vld [vmem:[#allocation2 + $0xf8] sm:$0xff] }
 0x2da   :  { %1604 = vst.msk [vmem:[%s3234_s5 + $0xf0] sm:$0xff] %vm69_vm0, %v1572_v52  ;;  %v1573_v58 = vadd.f32 %v3039_v7, %v1534_v43  ;;  %v1532_v53 = vld [vmem:[#allocation2 + $0xe8] sm:$0xff] }
 0x2db   :  { %1602 = vst.msk [vmem:[%s3234_s5 + $0xe0] sm:$0xff] %vm69_vm0, %v1570_v35  ;;  %v1571_v37 = vadd.f32 %v3039_v7, %v1532_v53 }
 0x2dc   :  { %1605 = vst.msk [vmem:[%s3234_s5 + $0xf8] sm:$0xff] %vm69_vm0, %v1573_v58 }
 0x2dd   :  { %1603 = vst.msk [vmem:[%s3234_s5 + $0xe8] sm:$0xff] %vm69_vm0, %v1571_v37 }

</bundles_post_ra>
